<compile_context>
chip_gen: v5e
topology: v5e:2x2
jax: 0.10.0
libtpu: 0.0.40
codegen_flags: <defaults>
</compile_context>

<pallas_src>
import numpy as np
import jax
import jax.numpy as jnp
from jax import lax
from jax.experimental import pallas as pl
from jax.experimental.pallas import tpu as pltpu

# ---- module hyper-parameters ----
INPUT_LENGTH = 24          # per-timestep feature width of x
SEQ_LEN = 8
BATCH = 2
NOP = 1                    # op-embedding width
NHIDDEN = 32
NLAYERS = 2
NARCHS = 1
TGT_LENGTH = 4
NIN = INPUT_LENGTH - 1 + NOP          # == 24 (== INPUT_LENGTH because nop == 1)
NOUT = NARCHS * TGT_LENGTH
NUM_OPS = 50               # nn.Embedding(50, nop)


# ---------------------------------------------------------------------------
# Fused kernel: embedding -> wavefronted 2-layer LSTM -> ReLU -> Linear
# ---------------------------------------------------------------------------
def fused_kernel(stats_ref, x_ref, table_ref,
                 wih0_ref, bias_ref, wblk_ref,
                 wlin_ref, blin_ref, out_ref):
    S, B, H = SEQ_LEN, BATCH, NHIDDEN
    SB = S * B
    H2 = 2 * H                                         # 64: fused [layer1|layer2] width

    xf = x_ref[...]                                    # (S*B, 24) f32, time-major
    mean1 = stats_ref[0]                               # SMEM scalars (op column)
    std1 = stats_ref[1]

    # --- op embedding (column 1): denormalize -> truncate to int (matches
    #     torch .long()) -> table lookup as compare/select + lane reduce -----
    idx = (xf[:, 1:2] * std1 + mean1).astype(jnp.int32)            # (SB, 1)
    iota = lax.broadcasted_iota(jnp.int32, (SB, NUM_OPS), 1)
    emb = jnp.sum(jnp.where(iota == idx, table_ref[...], 0.0),
                  axis=1, keepdims=True)                           # (SB, 1)

    # splice embedding into lane 1; W_ih rows 0/1 were pre-swapped so the
    # in-kernel column order [x0, emb, x2..x23] matches the reference
    # order [emb, x0, x2..x23].
    lane = lax.broadcasted_iota(jnp.int32, xf.shape, 1)
    x_in = jnp.where(lane == 1, emb, xf)                           # (SB, NIN)

    # --- input->gate contributions for ALL timesteps in the fused 8H layout
    #     [i1 i2 | f1 f2 | g1 g2 | o1 o2]; layer-2 input columns are zero in
    #     wih0_ref, and b0/b1 are folded into bias_ref once. ------------------
    gx = jnp.dot(x_in, wih0_ref[...],
                 preferred_element_type=jnp.float32) + bias_ref[...]   # (SB, 8H)

    wblk = wblk_ref[...]                               # (2H, 8H) block-diag recurrent

    def wavefront_step(h, c, gx_slab):
        # h = [h1_{w-1} | h2_{w-2}], c likewise.  One MXU push per step:
        #   layer-1 cols: h1 @ Whh0            (+ gx0_w + b0 via gx_slab)
        #   layer-2 cols: h1 @ Wih1 + h2 @ Whh1 (+ b1 via gx_slab)
        gates = gx_slab + jnp.dot(h, wblk, preferred_element_type=jnp.float32)
        sig = jax.nn.sigmoid(gates)                    # one EUP pass over (B, 8H)
        tnh = jnp.tanh(gates)
        # fused-layout gate blocks: i=[0:2H], f=[2H:4H], g=[4H:6H], o=[6H:8H]
        c = sig[:, H2:2 * H2] * c + sig[:, 0:H2] * tnh[:, 2 * H2:3 * H2]
        h = sig[:, 3 * H2:4 * H2] * jnp.tanh(c)        # -> [h1_w | h2_{w-1}]
        return h, c

    h = jnp.zeros((B, H2), jnp.float32)                # [h1 | h2]
    c = jnp.zeros((B, H2), jnp.float32)                # [c1 | c2]

    # w = 0: layer-1 step 0; the layer-2 half of the update is a spurious
    # "step -1" (pure bias), so mask it back to the zero initial state.
    h, c = wavefront_step(h, c, gx[0:B, :])
    keep1 = lax.broadcasted_iota(jnp.int32, (B, H2), 1) < H
    h = jnp.where(keep1, h, 0.0)
    c = jnp.where(keep1, c, 0.0)

    # w = 1 .. S-1: layer-1 step w and layer-2 step w-1, fused.
    for w in range(1, S):                              # static unroll, tiny carry
        h, c = wavefront_step(h, c, gx[w * B:(w + 1) * B, :])

    # w = S: only the layer-2 half (its step S-1) matters; its gx columns are
    # just b1 (constant across rows), so reuse the last row block.  The
    # garbage layer-1 half is never read.
    h, c = wavefront_step(h, c, gx[(S - 1) * B:S * B, :])

    # ReLU + Linear head on the last timestep (== forward(x)[:, -1, :])
    h2_last = h[:, H:H2]                               # layer-2 hidden, step S-1
    h_relu = jnp.maximum(h2_last, 0.0)
    out_ref[...] = (jnp.dot(h_relu, wlin_ref[...],
                            preferred_element_type=jnp.float32) + blin_ref[...])


# ---------------------------------------------------------------------------
# Wrapper: one-time weight packing into the fused wavefront layout + launch
# ---------------------------------------------------------------------------
def _scatter_gates(w4, layer):
    """(rows, 4H) [i f g o] -> (rows, 8H) with gate g at cols (2g+layer)*H."""
    H = NHIDDEN
    rows = w4.shape[0]
    out = jnp.zeros((rows, 8 * H), w4.dtype)
    for g in range(4):
        col = (2 * g + layer) * H
        out = out.at[:, col:col + H].set(w4[:, g * H:(g + 1) * H])
    return out


def ins_em_lstm_forward(x, params):
    mean, std, op_table, lstm_params, w_lin_t, b_lin = params
    B, S, F = x.shape
    H = NHIDDEN

    # time-major flattened (S*B, F): row t*B + b == (time t, batch b)
    x_tm = jnp.transpose(x, (1, 0, 2)).reshape(S * B, F)

    (wih0_t, whh0_t, b0), (wih1_t, whh1_t, b1) = lstm_params
    # swap W_ih rows 0/1 so the in-kernel column order [x0, emb, x2..] matches
    perm = np.array([1, 0] + list(range(2, NIN)))
    wih0_sw = wih0_t[perm]

    # Input->gate weights zero-padded into the fused 8H layout; both biases
    # folded into one (1, 8H) row.
    wih0_full = _scatter_gates(wih0_sw, 0)                               # (NIN, 8H)
    bias_full = (_scatter_gates(b0.reshape(1, 4 * H), 0)
                 + _scatter_gates(b1.reshape(1, 4 * H), 1))              # (1, 8H)

    # Block-diagonal recurrent weight [[Whh0, Wih1], [0, Whh1]] in the fused
    # layout: rows 0:H are driven by h1, rows H:2H by h2.
    w_block = jnp.concatenate(
        [_scatter_gates(whh0_t, 0) + _scatter_gates(wih1_t, 1),          # (H, 8H)
         _scatter_gates(whh1_t, 1)],                                     # (H, 8H)
        axis=0)                                                          # (2H, 8H)

    stats = jnp.stack([mean[1], std[1]]).astype(jnp.float32)             # (2,) 1-D SMEM
    table_row = op_table.reshape(1, NUM_OPS)                             # nop == 1 -> (1, 50)

    vmem = pl.BlockSpec(memory_space=pltpu.MemorySpace.VMEM)
    smem = pl.BlockSpec(memory_space=pltpu.MemorySpace.SMEM)

    out = pl.pallas_call(
        fused_kernel,
        out_shape=jax.ShapeDtypeStruct((B, NOUT), jnp.float32),
        in_specs=[smem] + [vmem] * 7,
        out_specs=vmem,
    )(stats, x_tm, table_row,
      wih0_full, bias_full, w_block,
      w_lin_t, b_lin.reshape(1, NOUT))
    return out


# ---------------------------------------------------------------------------
# Pure-JAX reference (same math, correctness check)
# ---------------------------------------------------------------------------
def reference_forward(x, params):
    mean, std, op_table, lstm_params, w_lin_t, b_lin = params
    ori = (x * std + mean).astype(jnp.int32)
    emb = op_table[ori[:, :, 1]]                                  # (B, S, NOP)
    rest = jnp.concatenate([x[:, :, 0:1], x[:, :, 2:]], axis=2)
    h = jnp.concatenate([emb, rest], axis=2)                      # (B, S, NIN)
    h = jnp.transpose(h, (1, 0, 2))                               # (S, B, NIN)
    B = x.shape[0]
    for (wih_t, whh_t, b) in lstm_params:
        H = whh_t.shape[0]

        def step(carry, x_t):
            hh, cc = carry
            gates = x_t @ wih_t + hh @ whh_t + b
            i = jax.nn.sigmoid(gates[:, :H])
            f = jax.nn.sigmoid(gates[:, H:2 * H])
            g = jnp.tanh(gates[:, 2 * H:3 * H])
            o = jax.nn.sigmoid(gates[:, 3 * H:])
            cc = f * cc + i * g
            hh = o * jnp.tanh(cc)
            return (hh, cc), hh

        init = (jnp.zeros((B, H), jnp.float32), jnp.zeros((B, H), jnp.float32))
        _, h = lax.scan(step, init, h)
    h_last = jnp.maximum(h[-1], 0.0)
    return h_last @ w_lin_t + b_lin


# ---------------------------------------------------------------------------
# Deterministic parameter init (shapes from the module's __init__)
# ---------------------------------------------------------------------------
def init_params(key):
    ks = jax.random.split(key, 4)
    # stats.npz replaced deterministically (std==0 -> 1 rule trivially holds)
    mean = jnp.zeros((INPUT_LENGTH,), jnp.float32)
    std = jnp.ones((INPUT_LENGTH,), jnp.float32)
    # nn.Embedding(50, nop): N(0, 1)
    op_table = jax.random.normal(ks[0], (NUM_OPS, NOP), jnp.float32)
    bound = 1.0 / np.sqrt(NHIDDEN)
    lstm_params = []
    nin_l = NIN
    k_lstm = jax.random.split(ks[1], NLAYERS * 4)
    for l in range(NLAYERS):
        wih = jax.random.uniform(k_lstm[4 * l + 0], (4 * NHIDDEN, nin_l),
                                 minval=-bound, maxval=bound, dtype=jnp.float32)
        whh = jax.random.uniform(k_lstm[4 * l + 1], (4 * NHIDDEN, NHIDDEN),
                                 minval=-bound, maxval=bound, dtype=jnp.float32)
        bih = jax.random.uniform(k_lstm[4 * l + 2], (4 * NHIDDEN,),
                                 minval=-bound, maxval=bound, dtype=jnp.float32)
        bhh = jax.random.uniform(k_lstm[4 * l + 3], (4 * NHIDDEN,),
                                 minval=-bound, maxval=bound, dtype=jnp.float32)
        lstm_params.append((wih.T, whh.T, bih + bhh))
        nin_l = NHIDDEN
    w_lin = jax.random.uniform(ks[2], (NOUT, NHIDDEN),
                               minval=-bound, maxval=bound, dtype=jnp.float32)
    b_lin = jax.random.uniform(ks[3], (NOUT,),
                               minval=-bound, maxval=bound, dtype=jnp.float32)
    return (mean, std, op_table, lstm_params, w_lin.T, b_lin)


if __name__ == "__main__":
    key = jax.random.PRNGKey(0)
    kx, kop, kp = jax.random.split(key, 3)
    params = init_params(kp)

    # x: (B, S, INPUT_LENGTH) float32; column 1 holds integer op codes in [0, 50)
    x = jax.random.normal(kx, (BATCH, SEQ_LEN, INPUT_LENGTH), jnp.float32)
    op_codes = jax.random.randint(kop, (BATCH, SEQ_LEN), 0, NUM_OPS).astype(jnp.float32)
    x = x.at[:, :, 1].set(op_codes)

    out = jax.block_until_ready(ins_em_lstm_forward(x, params))

    ref = reference_forward(x, params)
    np.testing.assert_allclose(np.asarray(out), np.asarray(ref), rtol=2e-2, atol=2e-2)
    assert out.shape == (BATCH, NOUT)
    print("KERNEL_OK")
</pallas_src>

<mosaic_0001>
module attributes {stable_mosaic.version = 11 : i64} {
  func.func @fused_kernel(%arg0: memref<2xf32, #tpu.memory_space<smem>>, %arg1: memref<16x24xf32, #tpu.memory_space<vmem>>, %arg2: memref<1x50xf32, #tpu.memory_space<vmem>>, %arg3: memref<24x256xf32, #tpu.memory_space<vmem>>, %arg4: memref<1x256xf32, #tpu.memory_space<vmem>>, %arg5: memref<64x256xf32, #tpu.memory_space<vmem>>, %arg6: memref<32x4xf32, #tpu.memory_space<vmem>>, %arg7: memref<1x4xf32, #tpu.memory_space<vmem>>, %arg8: memref<2x4xf32, #tpu.memory_space<vmem>>) attributes {dimension_semantics = [], scalar_prefetch = 0 : i64, scratch_operands = 0 : i64, tpu.core_type = #tpu.core_type<tc>} {
    %c0 = arith.constant 0 : index
    %c0_0 = arith.constant 0 : index
    %0 = vector.load %arg1[%c0, %c0_0] : memref<16x24xf32, #tpu.memory_space<vmem>>, vector<16x24xf32>
    %c0_1 = arith.constant 0 : index
    %1 = memref.load %arg0[%c0_1] : memref<2xf32, #tpu.memory_space<smem>>
    %c1 = arith.constant 1 : index
    %2 = memref.load %arg0[%c1] : memref<2xf32, #tpu.memory_space<smem>>
    %3 = vector.extract_strided_slice %0 {offsets = [0, 1], sizes = [16, 1], strides = [1, 1]} : vector<16x24xf32> to vector<16x1xf32>
    %4 = vector.broadcast %2 : f32 to vector<16x1xf32>
    %5 = arith.mulf %3, %4 : vector<16x1xf32>
    %6 = vector.broadcast %1 : f32 to vector<16x1xf32>
    %7 = arith.addf %5, %6 : vector<16x1xf32>
    %8 = arith.fptosi %7 : vector<16x1xf32> to vector<16x1xi32>
    %9 = tpu.iota {dimensions = array<i32: 1>} : vector<16x50xi32>
    %10 = vector.broadcast %8 : vector<16x1xi32> to vector<16x50xi32>
    %11 = arith.cmpi eq, %9, %10 : vector<16x50xi32>
    %c0_2 = arith.constant 0 : index
    %c0_3 = arith.constant 0 : index
    %12 = vector.load %arg2[%c0_2, %c0_3] : memref<1x50xf32, #tpu.memory_space<vmem>>, vector<1x50xf32>
    %cst = arith.constant 0.000000e+00 : f32
    %13 = vector.shape_cast %12 : vector<1x50xf32> to vector<1x50xf32>
    %14 = vector.broadcast %13 : vector<1x50xf32> to vector<16x50xf32>
    %15 = vector.broadcast %cst : f32 to vector<16x50xf32>
    %16 = arith.select %11, %14, %15 : vector<16x50xi1>, vector<16x50xf32>
    %cst_4 = arith.constant dense<0.000000e+00> : vector<16xf32>
    %17 = vector.multi_reduction <add>, %16, %cst_4 [1] : vector<16x50xf32> to vector<16xf32>
    %18 = vector.shape_cast %17 : vector<16xf32> to vector<16x1xf32>
    %19 = tpu.iota {dimensions = array<i32: 1>} : vector<16x24xi32>
    %c1_i32 = arith.constant 1 : i32
    %20 = vector.broadcast %c1_i32 : i32 to vector<16x24xi32>
    %21 = arith.cmpi eq, %19, %20 : vector<16x24xi32>
    %22 = vector.shape_cast %18 : vector<16x1xf32> to vector<16x1xf32>
    %23 = vector.broadcast %22 : vector<16x1xf32> to vector<16x24xf32>
    %24 = arith.select %21, %23, %0 : vector<16x24xi1>, vector<16x24xf32>
    %c0_5 = arith.constant 0 : index
    %c0_6 = arith.constant 0 : index
    %25 = vector.load %arg3[%c0_5, %c0_6] : memref<24x256xf32, #tpu.memory_space<vmem>>, vector<24x256xf32>
    %cst_7 = arith.constant dense<0.000000e+00> : vector<16x256xf32>
    %26 = tpu.matmul %24, %25, %cst_7 {dimension_numbers = #tpu.dot_dimension_numbers<[1], [0], [0], [1], [0, 0, 1, 1], [], []>} : vector<16x24xf32>, vector<24x256xf32>, vector<16x256xf32> -> vector<16x256xf32>
    %c0_8 = arith.constant 0 : index
    %c0_9 = arith.constant 0 : index
    %27 = vector.load %arg4[%c0_8, %c0_9] : memref<1x256xf32, #tpu.memory_space<vmem>>, vector<1x256xf32>
    %28 = vector.broadcast %27 : vector<1x256xf32> to vector<16x256xf32>
    %29 = arith.addf %26, %28 : vector<16x256xf32>
    %c0_10 = arith.constant 0 : index
    %c0_11 = arith.constant 0 : index
    %30 = vector.load %arg5[%c0_10, %c0_11] : memref<64x256xf32, #tpu.memory_space<vmem>>, vector<64x256xf32>
    %cst_12 = arith.constant 0.000000e+00 : f32
    %31 = vector.broadcast %cst_12 : f32 to vector<2x64xf32>
    %cst_13 = arith.constant 0.000000e+00 : f32
    %32 = vector.broadcast %cst_13 : f32 to vector<2x64xf32>
    %33 = vector.extract_strided_slice %29 {offsets = [0, 0], sizes = [2, 256], strides = [1, 1]} : vector<16x256xf32> to vector<2x256xf32>
    %cst_14 = arith.constant dense<0.000000e+00> : vector<2x256xf32>
    %34 = tpu.matmul %31, %30, %cst_14 {dimension_numbers = #tpu.dot_dimension_numbers<[1], [0], [0], [1], [0, 0, 1, 1], [], []>} : vector<2x64xf32>, vector<64x256xf32>, vector<2x256xf32> -> vector<2x256xf32>
    %35 = arith.addf %33, %34 : vector<2x256xf32>
    %36 = arith.negf %35 : vector<2x256xf32>
    %37 = math.exp %36 : vector<2x256xf32>
    %cst_15 = arith.constant 1.000000e+00 : f32
    %38 = vector.broadcast %cst_15 : f32 to vector<2x256xf32>
    %39 = arith.addf %38, %37 : vector<2x256xf32>
    %40 = arith.divf %38, %39 : vector<2x256xf32>
    %41 = math.tanh %35 : vector<2x256xf32>
    %42 = vector.extract_strided_slice %40 {offsets = [0, 64], sizes = [2, 64], strides = [1, 1]} : vector<2x256xf32> to vector<2x64xf32>
    %43 = arith.mulf %42, %32 : vector<2x64xf32>
    %44 = vector.extract_strided_slice %40 {offsets = [0, 0], sizes = [2, 64], strides = [1, 1]} : vector<2x256xf32> to vector<2x64xf32>
    %45 = vector.extract_strided_slice %41 {offsets = [0, 128], sizes = [2, 64], strides = [1, 1]} : vector<2x256xf32> to vector<2x64xf32>
    %46 = arith.mulf %44, %45 : vector<2x64xf32>
    %47 = arith.addf %43, %46 : vector<2x64xf32>
    %48 = vector.extract_strided_slice %40 {offsets = [0, 192], sizes = [2, 64], strides = [1, 1]} : vector<2x256xf32> to vector<2x64xf32>
    %49 = math.tanh %47 : vector<2x64xf32>
    %50 = arith.mulf %48, %49 : vector<2x64xf32>
    %51 = tpu.iota {dimensions = array<i32: 1>} : vector<2x64xi32>
    %c32_i32 = arith.constant 32 : i32
    %52 = vector.broadcast %c32_i32 : i32 to vector<2x64xi32>
    %53 = arith.cmpi slt, %51, %52 : vector<2x64xi32>
    %cst_16 = arith.constant 0.000000e+00 : f32
    %54 = vector.broadcast %cst_16 : f32 to vector<2x64xf32>
    %55 = arith.select %53, %50, %54 : vector<2x64xi1>, vector<2x64xf32>
    %cst_17 = arith.constant 0.000000e+00 : f32
    %56 = vector.broadcast %cst_17 : f32 to vector<2x64xf32>
    %57 = arith.select %53, %47, %56 : vector<2x64xi1>, vector<2x64xf32>
    %58 = vector.extract_strided_slice %29 {offsets = [2, 0], sizes = [2, 256], strides = [1, 1]} : vector<16x256xf32> to vector<2x256xf32>
    %cst_18 = arith.constant dense<0.000000e+00> : vector<2x256xf32>
    %59 = tpu.matmul %55, %30, %cst_18 {dimension_numbers = #tpu.dot_dimension_numbers<[1], [0], [0], [1], [0, 0, 1, 1], [], []>} : vector<2x64xf32>, vector<64x256xf32>, vector<2x256xf32> -> vector<2x256xf32>
    %60 = arith.addf %58, %59 : vector<2x256xf32>
    %61 = arith.negf %60 : vector<2x256xf32>
    %62 = math.exp %61 : vector<2x256xf32>
    %cst_19 = arith.constant 1.000000e+00 : f32
    %63 = vector.broadcast %cst_19 : f32 to vector<2x256xf32>
    %64 = arith.addf %63, %62 : vector<2x256xf32>
    %65 = arith.divf %63, %64 : vector<2x256xf32>
    %66 = math.tanh %60 : vector<2x256xf32>
    %67 = vector.extract_strided_slice %65 {offsets = [0, 64], sizes = [2, 64], strides = [1, 1]} : vector<2x256xf32> to vector<2x64xf32>
    %68 = arith.mulf %67, %57 : vector<2x64xf32>
    %69 = vector.extract_strided_slice %65 {offsets = [0, 0], sizes = [2, 64], strides = [1, 1]} : vector<2x256xf32> to vector<2x64xf32>
    %70 = vector.extract_strided_slice %66 {offsets = [0, 128], sizes = [2, 64], strides = [1, 1]} : vector<2x256xf32> to vector<2x64xf32>
    %71 = arith.mulf %69, %70 : vector<2x64xf32>
    %72 = arith.addf %68, %71 : vector<2x64xf32>
    %73 = vector.extract_strided_slice %65 {offsets = [0, 192], sizes = [2, 64], strides = [1, 1]} : vector<2x256xf32> to vector<2x64xf32>
    %74 = math.tanh %72 : vector<2x64xf32>
    %75 = arith.mulf %73, %74 : vector<2x64xf32>
    %76 = vector.extract_strided_slice %29 {offsets = [4, 0], sizes = [2, 256], strides = [1, 1]} : vector<16x256xf32> to vector<2x256xf32>
    %cst_20 = arith.constant dense<0.000000e+00> : vector<2x256xf32>
    %77 = tpu.matmul %75, %30, %cst_20 {dimension_numbers = #tpu.dot_dimension_numbers<[1], [0], [0], [1], [0, 0, 1, 1], [], []>} : vector<2x64xf32>, vector<64x256xf32>, vector<2x256xf32> -> vector<2x256xf32>
    %78 = arith.addf %76, %77 : vector<2x256xf32>
    %79 = arith.negf %78 : vector<2x256xf32>
    %80 = math.exp %79 : vector<2x256xf32>
    %cst_21 = arith.constant 1.000000e+00 : f32
    %81 = vector.broadcast %cst_21 : f32 to vector<2x256xf32>
    %82 = arith.addf %81, %80 : vector<2x256xf32>
    %83 = arith.divf %81, %82 : vector<2x256xf32>
    %84 = math.tanh %78 : vector<2x256xf32>
    %85 = vector.extract_strided_slice %83 {offsets = [0, 64], sizes = [2, 64], strides = [1, 1]} : vector<2x256xf32> to vector<2x64xf32>
    %86 = arith.mulf %85, %72 : vector<2x64xf32>
    %87 = vector.extract_strided_slice %83 {offsets = [0, 0], sizes = [2, 64], strides = [1, 1]} : vector<2x256xf32> to vector<2x64xf32>
    %88 = vector.extract_strided_slice %84 {offsets = [0, 128], sizes = [2, 64], strides = [1, 1]} : vector<2x256xf32> to vector<2x64xf32>
    %89 = arith.mulf %87, %88 : vector<2x64xf32>
    %90 = arith.addf %86, %89 : vector<2x64xf32>
    %91 = vector.extract_strided_slice %83 {offsets = [0, 192], sizes = [2, 64], strides = [1, 1]} : vector<2x256xf32> to vector<2x64xf32>
    %92 = math.tanh %90 : vector<2x64xf32>
    %93 = arith.mulf %91, %92 : vector<2x64xf32>
    %94 = vector.extract_strided_slice %29 {offsets = [6, 0], sizes = [2, 256], strides = [1, 1]} : vector<16x256xf32> to vector<2x256xf32>
    %cst_22 = arith.constant dense<0.000000e+00> : vector<2x256xf32>
    %95 = tpu.matmul %93, %30, %cst_22 {dimension_numbers = #tpu.dot_dimension_numbers<[1], [0], [0], [1], [0, 0, 1, 1], [], []>} : vector<2x64xf32>, vector<64x256xf32>, vector<2x256xf32> -> vector<2x256xf32>
    %96 = arith.addf %94, %95 : vector<2x256xf32>
    %97 = arith.negf %96 : vector<2x256xf32>
    %98 = math.exp %97 : vector<2x256xf32>
    %cst_23 = arith.constant 1.000000e+00 : f32
    %99 = vector.broadcast %cst_23 : f32 to vector<2x256xf32>
    %100 = arith.addf %99, %98 : vector<2x256xf32>
    %101 = arith.divf %99, %100 : vector<2x256xf32>
    %102 = math.tanh %96 : vector<2x256xf32>
    %103 = vector.extract_strided_slice %101 {offsets = [0, 64], sizes = [2, 64], strides = [1, 1]} : vector<2x256xf32> to vector<2x64xf32>
    %104 = arith.mulf %103, %90 : vector<2x64xf32>
    %105 = vector.extract_strided_slice %101 {offsets = [0, 0], sizes = [2, 64], strides = [1, 1]} : vector<2x256xf32> to vector<2x64xf32>
    %106 = vector.extract_strided_slice %102 {offsets = [0, 128], sizes = [2, 64], strides = [1, 1]} : vector<2x256xf32> to vector<2x64xf32>
    %107 = arith.mulf %105, %106 : vector<2x64xf32>
    %108 = arith.addf %104, %107 : vector<2x64xf32>
    %109 = vector.extract_strided_slice %101 {offsets = [0, 192], sizes = [2, 64], strides = [1, 1]} : vector<2x256xf32> to vector<2x64xf32>
    %110 = math.tanh %108 : vector<2x64xf32>
    %111 = arith.mulf %109, %110 : vector<2x64xf32>
    %112 = vector.extract_strided_slice %29 {offsets = [8, 0], sizes = [2, 256], strides = [1, 1]} : vector<16x256xf32> to vector<2x256xf32>
    %cst_24 = arith.constant dense<0.000000e+00> : vector<2x256xf32>
    %113 = tpu.matmul %111, %30, %cst_24 {dimension_numbers = #tpu.dot_dimension_numbers<[1], [0], [0], [1], [0, 0, 1, 1], [], []>} : vector<2x64xf32>, vector<64x256xf32>, vector<2x256xf32> -> vector<2x256xf32>
    %114 = arith.addf %112, %113 : vector<2x256xf32>
    %115 = arith.negf %114 : vector<2x256xf32>
    %116 = math.exp %115 : vector<2x256xf32>
    %cst_25 = arith.constant 1.000000e+00 : f32
    %117 = vector.broadcast %cst_25 : f32 to vector<2x256xf32>
    %118 = arith.addf %117, %116 : vector<2x256xf32>
    %119 = arith.divf %117, %118 : vector<2x256xf32>
    %120 = math.tanh %114 : vector<2x256xf32>
    %121 = vector.extract_strided_slice %119 {offsets = [0, 64], sizes = [2, 64], strides = [1, 1]} : vector<2x256xf32> to vector<2x64xf32>
    %122 = arith.mulf %121, %108 : vector<2x64xf32>
    %123 = vector.extract_strided_slice %119 {offsets = [0, 0], sizes = [2, 64], strides = [1, 1]} : vector<2x256xf32> to vector<2x64xf32>
    %124 = vector.extract_strided_slice %120 {offsets = [0, 128], sizes = [2, 64], strides = [1, 1]} : vector<2x256xf32> to vector<2x64xf32>
    %125 = arith.mulf %123, %124 : vector<2x64xf32>
    %126 = arith.addf %122, %125 : vector<2x64xf32>
    %127 = vector.extract_strided_slice %119 {offsets = [0, 192], sizes = [2, 64], strides = [1, 1]} : vector<2x256xf32> to vector<2x64xf32>
    %128 = math.tanh %126 : vector<2x64xf32>
    %129 = arith.mulf %127, %128 : vector<2x64xf32>
    %130 = vector.extract_strided_slice %29 {offsets = [10, 0], sizes = [2, 256], strides = [1, 1]} : vector<16x256xf32> to vector<2x256xf32>
    %cst_26 = arith.constant dense<0.000000e+00> : vector<2x256xf32>
    %131 = tpu.matmul %129, %30, %cst_26 {dimension_numbers = #tpu.dot_dimension_numbers<[1], [0], [0], [1], [0, 0, 1, 1], [], []>} : vector<2x64xf32>, vector<64x256xf32>, vector<2x256xf32> -> vector<2x256xf32>
    %132 = arith.addf %130, %131 : vector<2x256xf32>
    %133 = arith.negf %132 : vector<2x256xf32>
    %134 = math.exp %133 : vector<2x256xf32>
    %cst_27 = arith.constant 1.000000e+00 : f32
    %135 = vector.broadcast %cst_27 : f32 to vector<2x256xf32>
    %136 = arith.addf %135, %134 : vector<2x256xf32>
    %137 = arith.divf %135, %136 : vector<2x256xf32>
    %138 = math.tanh %132 : vector<2x256xf32>
    %139 = vector.extract_strided_slice %137 {offsets = [0, 64], sizes = [2, 64], strides = [1, 1]} : vector<2x256xf32> to vector<2x64xf32>
    %140 = arith.mulf %139, %126 : vector<2x64xf32>
    %141 = vector.extract_strided_slice %137 {offsets = [0, 0], sizes = [2, 64], strides = [1, 1]} : vector<2x256xf32> to vector<2x64xf32>
    %142 = vector.extract_strided_slice %138 {offsets = [0, 128], sizes = [2, 64], strides = [1, 1]} : vector<2x256xf32> to vector<2x64xf32>
    %143 = arith.mulf %141, %142 : vector<2x64xf32>
    %144 = arith.addf %140, %143 : vector<2x64xf32>
    %145 = vector.extract_strided_slice %137 {offsets = [0, 192], sizes = [2, 64], strides = [1, 1]} : vector<2x256xf32> to vector<2x64xf32>
    %146 = math.tanh %144 : vector<2x64xf32>
    %147 = arith.mulf %145, %146 : vector<2x64xf32>
    %148 = vector.extract_strided_slice %29 {offsets = [12, 0], sizes = [2, 256], strides = [1, 1]} : vector<16x256xf32> to vector<2x256xf32>
    %cst_28 = arith.constant dense<0.000000e+00> : vector<2x256xf32>
    %149 = tpu.matmul %147, %30, %cst_28 {dimension_numbers = #tpu.dot_dimension_numbers<[1], [0], [0], [1], [0, 0, 1, 1], [], []>} : vector<2x64xf32>, vector<64x256xf32>, vector<2x256xf32> -> vector<2x256xf32>
    %150 = arith.addf %148, %149 : vector<2x256xf32>
    %151 = arith.negf %150 : vector<2x256xf32>
    %152 = math.exp %151 : vector<2x256xf32>
    %cst_29 = arith.constant 1.000000e+00 : f32
    %153 = vector.broadcast %cst_29 : f32 to vector<2x256xf32>
    %154 = arith.addf %153, %152 : vector<2x256xf32>
    %155 = arith.divf %153, %154 : vector<2x256xf32>
    %156 = math.tanh %150 : vector<2x256xf32>
    %157 = vector.extract_strided_slice %155 {offsets = [0, 64], sizes = [2, 64], strides = [1, 1]} : vector<2x256xf32> to vector<2x64xf32>
    %158 = arith.mulf %157, %144 : vector<2x64xf32>
    %159 = vector.extract_strided_slice %155 {offsets = [0, 0], sizes = [2, 64], strides = [1, 1]} : vector<2x256xf32> to vector<2x64xf32>
    %160 = vector.extract_strided_slice %156 {offsets = [0, 128], sizes = [2, 64], strides = [1, 1]} : vector<2x256xf32> to vector<2x64xf32>
    %161 = arith.mulf %159, %160 : vector<2x64xf32>
    %162 = arith.addf %158, %161 : vector<2x64xf32>
    %163 = vector.extract_strided_slice %155 {offsets = [0, 192], sizes = [2, 64], strides = [1, 1]} : vector<2x256xf32> to vector<2x64xf32>
    %164 = math.tanh %162 : vector<2x64xf32>
    %165 = arith.mulf %163, %164 : vector<2x64xf32>
    %166 = vector.extract_strided_slice %29 {offsets = [14, 0], sizes = [2, 256], strides = [1, 1]} : vector<16x256xf32> to vector<2x256xf32>
    %cst_30 = arith.constant dense<0.000000e+00> : vector<2x256xf32>
    %167 = tpu.matmul %165, %30, %cst_30 {dimension_numbers = #tpu.dot_dimension_numbers<[1], [0], [0], [1], [0, 0, 1, 1], [], []>} : vector<2x64xf32>, vector<64x256xf32>, vector<2x256xf32> -> vector<2x256xf32>
    %168 = arith.addf %166, %167 : vector<2x256xf32>
    %169 = arith.negf %168 : vector<2x256xf32>
    %170 = math.exp %169 : vector<2x256xf32>
    %cst_31 = arith.constant 1.000000e+00 : f32
    %171 = vector.broadcast %cst_31 : f32 to vector<2x256xf32>
    %172 = arith.addf %171, %170 : vector<2x256xf32>
    %173 = arith.divf %171, %172 : vector<2x256xf32>
    %174 = math.tanh %168 : vector<2x256xf32>
    %175 = vector.extract_strided_slice %173 {offsets = [0, 64], sizes = [2, 64], strides = [1, 1]} : vector<2x256xf32> to vector<2x64xf32>
    %176 = arith.mulf %175, %162 : vector<2x64xf32>
    %177 = vector.extract_strided_slice %173 {offsets = [0, 0], sizes = [2, 64], strides = [1, 1]} : vector<2x256xf32> to vector<2x64xf32>
    %178 = vector.extract_strided_slice %174 {offsets = [0, 128], sizes = [2, 64], strides = [1, 1]} : vector<2x256xf32> to vector<2x64xf32>
    %179 = arith.mulf %177, %178 : vector<2x64xf32>
    %180 = arith.addf %176, %179 : vector<2x64xf32>
    %181 = vector.extract_strided_slice %173 {offsets = [0, 192], sizes = [2, 64], strides = [1, 1]} : vector<2x256xf32> to vector<2x64xf32>
    %182 = math.tanh %180 : vector<2x64xf32>
    %183 = arith.mulf %181, %182 : vector<2x64xf32>
    %184 = vector.extract_strided_slice %29 {offsets = [14, 0], sizes = [2, 256], strides = [1, 1]} : vector<16x256xf32> to vector<2x256xf32>
    %cst_32 = arith.constant dense<0.000000e+00> : vector<2x256xf32>
    %185 = tpu.matmul %183, %30, %cst_32 {dimension_numbers = #tpu.dot_dimension_numbers<[1], [0], [0], [1], [0, 0, 1, 1], [], []>} : vector<2x64xf32>, vector<64x256xf32>, vector<2x256xf32> -> vector<2x256xf32>
    %186 = arith.addf %184, %185 : vector<2x256xf32>
    %187 = arith.negf %186 : vector<2x256xf32>
    %188 = math.exp %187 : vector<2x256xf32>
    %cst_33 = arith.constant 1.000000e+00 : f32
    %189 = vector.broadcast %cst_33 : f32 to vector<2x256xf32>
    %190 = arith.addf %189, %188 : vector<2x256xf32>
    %191 = arith.divf %189, %190 : vector<2x256xf32>
    %192 = math.tanh %186 : vector<2x256xf32>
    %193 = vector.extract_strided_slice %191 {offsets = [0, 64], sizes = [2, 64], strides = [1, 1]} : vector<2x256xf32> to vector<2x64xf32>
    %194 = arith.mulf %193, %180 : vector<2x64xf32>
    %195 = vector.extract_strided_slice %191 {offsets = [0, 0], sizes = [2, 64], strides = [1, 1]} : vector<2x256xf32> to vector<2x64xf32>
    %196 = vector.extract_strided_slice %192 {offsets = [0, 128], sizes = [2, 64], strides = [1, 1]} : vector<2x256xf32> to vector<2x64xf32>
    %197 = arith.mulf %195, %196 : vector<2x64xf32>
    %198 = arith.addf %194, %197 : vector<2x64xf32>
    %199 = vector.extract_strided_slice %191 {offsets = [0, 192], sizes = [2, 64], strides = [1, 1]} : vector<2x256xf32> to vector<2x64xf32>
    %200 = math.tanh %198 : vector<2x64xf32>
    %201 = arith.mulf %199, %200 : vector<2x64xf32>
    %202 = vector.extract_strided_slice %201 {offsets = [0, 32], sizes = [2, 32], strides = [1, 1]} : vector<2x64xf32> to vector<2x32xf32>
    %cst_34 = arith.constant 0.000000e+00 : f32
    %203 = vector.broadcast %cst_34 : f32 to vector<2x32xf32>
    %204 = arith.maximumf %202, %203 : vector<2x32xf32>
    %c0_35 = arith.constant 0 : index
    %c0_36 = arith.constant 0 : index
    %205 = vector.load %arg6[%c0_35, %c0_36] : memref<32x4xf32, #tpu.memory_space<vmem>>, vector<32x4xf32>
    %cst_37 = arith.constant dense<0.000000e+00> : vector<2x4xf32>
    %206 = tpu.matmul %204, %205, %cst_37 {dimension_numbers = #tpu.dot_dimension_numbers<[1], [0], [0], [1], [0, 0, 1, 1], [], []>} : vector<2x32xf32>, vector<32x4xf32>, vector<2x4xf32> -> vector<2x4xf32>
    %c0_38 = arith.constant 0 : index
    %c0_39 = arith.constant 0 : index
    %207 = vector.load %arg7[%c0_38, %c0_39] : memref<1x4xf32, #tpu.memory_space<vmem>>, vector<1x4xf32>
    %208 = vector.broadcast %207 : vector<1x4xf32> to vector<2x4xf32>
    %209 = arith.addf %206, %208 : vector<2x4xf32>
    %c0_40 = arith.constant 0 : index
    %c0_41 = arith.constant 0 : index
    %210 = vector.load %arg8[%c0_40, %c0_41] : memref<2x4xf32, #tpu.memory_space<vmem>>, vector<2x4xf32>
    tpu.vector_store %arg8[%c0_40, %c0_41], %209 {strides = array<i32>} : memref<2x4xf32, #tpu.memory_space<vmem>>, vector<2x4xf32>,
    return
  }
}

</mosaic_0001>

<bundles_post_ra>
// kernel: tpu_custom_call.1
= control target key start
LH: loop header
LB: loop body
LE: loop exit
PB: predicated region body
PF: predicated region fallthrough
CT: control target
= control target key end

     0   :  { %13 = vsyncpa [#allocation5], 0  ;;  %s1860_s0 = inlined_call_operand.vmem [shape: f32[2], index: 0, kind: input, shape index: {}]   ;;  %s1861_s1 = inlined_call_operand.vmem [shape: f32[16,24], index: 1, kind: input, shape index: {}]   ;;  %s1862_s2 = inlined_call_operand.vmem [shape: f32[1,50], index: 2, kind: input, shape index: {}]   ;;  %s1863_s3 = inlined_call_operand.hbm [shape: f32[24,256], index: 3, kind: input, shape index: {}]   ;;  %s1864_s4 = inlined_call_operand.vmem [shape: f32[1,256], index: 4, kind: input, shape index: {}]   ;;  %s1865_s5 = inlined_call_operand.hbm [shape: f32[64,256], index: 5, kind: input, shape index: {}]   ;;  %s1866_s6 = inlined_call_operand.vmem [shape: f32[32,4], index: 6, kind: input, shape index: {}]   ;;  %s1867_s7 = inlined_call_operand.vmem [shape: f32[1,4], index: 7, kind: input, shape index: {}]   ;;  %s1868_s8 = inlined_call_operand.hbm [shape: f32[2,4], index: 8, kind: output, shape index: {}]  }
   0x1   :  { %14 = vsyncpa [#allocation3], 0 }
   0x2   :  { %15 = vsyncpa [#allocation8], 0 }
   0x3   :  { %16 = vsyncpa [#allocation4], 0  ;;  %s22_s29 = sshll.u32 %s1860_s0, 4  ;;  %s34_s10 = sshll.u32 %s1863_s3, 4  ;;  %s23_s29 = int_to_ptr.vmem [resolvable:$true] %s22_s29  ;;  %s35_s10 = int_to_ptr.hbm [resolvable:$true] %s34_s10 }
   0x4   :  { %s1449_s11 = smov [#allocation2]   ;;  %s1450_s12 = smov [#allocation6]  }
   0x5   :  { %25 = dma.vmem_to_smem %s23_s29, 16, %s1449_s11, [#allocation5]  }
   0x6   :  { %s36_s13 = sshll.u32 %s1450_s12, 4  ;;  %s1451_s14 = smov 256   ;;  %s37_s13 = int_to_ptr.vmem [resolvable:$true] %s36_s13 }
   0x7   :  { %s1452_s15 = smov 16   ;;  %s49_s18 = sshll.u32 %s1865_s5, 4  ;;  %s50_s18 = int_to_ptr.hbm [resolvable:$true] %s49_s18 }
   0x8   :  { %42 = dma.hbm_to_vmem [thread:$0]  %s35_s10, 768, %s37_s13, [#allocation3], %s1451_s14, %s1451_s14, %s1452_s15  }
   0x9   :  { %s1453_s0 = smov [#allocation7]  }
   0xa   :  { %s51_s19 = sshll.u32 %s1453_s0, 4  ;;  %s52_s19 = int_to_ptr.vmem [resolvable:$true] %s51_s19 }
   0xb   :  { %57 = dma.hbm_to_vmem [thread:$0]  %s50_s18, 2048, %s52_s19, [#allocation8], %s1451_s14, %s1451_s14, %s1452_s15  }
   0xc   :  { %1441 = dma.done.wait [#allocation5], 16  }
   0xd   :  { %1442 = vsyncadd [#allocation5], 4294967280 }
   0xe   :  { %1443 = dma.done.wait [#allocation3], 768  }
   0xf   :  { %1444 = vsyncadd [#allocation3], 4294966528 }
  0x10   :  { %1445 = dma.done.wait [#allocation8], 2048  }
  0x11   :  { %1446 = vsyncadd [#allocation8], 4294965248 }
  0x12   :  { %74 = sfence }
  0x13   :  { %s1513_s3 = sld [smem:[#allocation2]]  ;;  %v1454_v0 = vmov 1   ;;  %v1520_v1 = vld [vmem:[%s1861_s1] sm:$0xff]  ;;  %v1531_v11 = vld [vmem:[#allocation7 + $0x78] sm:$0xff]  ;;  %v1533_v12 = vld [vmem:[#allocation7 + $0x60] sm:$0xff]  ;;  %v1455_v30 = vmov 0.0   ;;  %v87_v31 = vlaneseq }
  0x14   :  { %1245 = vset.pattern.permute.xlu0 %v1454_v0  ;;  %s1515_s20 = sld [smem:[#allocation2 + $0x1]]  ;;  %1246 = vset.pattern.permute.xlu1 %v1454_v0  ;;  %v1529_v10 = vld [vmem:[#allocation7 + $0x70] sm:$0xff]  ;;  %v1537_v13 = vld [vmem:[#allocation7 + $0x68] sm:$0xff]  ;;  %v1541_v15 = vld [vmem:[#allocation7 + $0x58] sm:$0xff]  ;;  %vm103_vm1 = vcmask 408576   ;;  %vm125_vm4 = vcmask 195584  }
  0x15   :  { %206 = vmatpush.msra.mxu2 %v1529_v10  ;;  %226 = vmatpush.msra.mxu3 %v1531_v11  ;;  %v1539_v14 = vld [vmem:[#allocation7 + $0x50] sm:$0xff]  ;;  %v1545_v16 = vld [vmem:[#allocation7 + $0x40] sm:$0xff]  ;;  %v1547_v17 = vld [vmem:[#allocation7 + $0x48] sm:$0xff]  ;;  %v1585_v32 = vand.u32 127, %v87_v31  ;;  %s1458_s14 = smov [#allocation9]   ;;  %s1173_s18 = sshll.u32 %s1868_s8, 4  ;;  %s1174_s18 = int_to_ptr.hbm [resolvable:$true] %s1173_s18 }
  0x16   :  { %v117_v18 = vld [vmem:[#allocation6 + $0x20] sm:$0xff]  ;;  %v118_v20 = vld [vmem:[#allocation6 + $0x28] sm:$0xff]  ;;  %v115_v22 = vld [vmem:[#allocation6 + $0x10] sm:$0xff]  ;;  %s1171_s15 = sshll.u32 %s1458_s14, 4  ;;  %s1172_s15 = int_to_ptr.vmem [resolvable:$true] %s1171_s15 }
  0x17   :  { %207 = vmatpush.msra.mxu2 %v1533_v12  ;;  %227 = vmatpush.msra.mxu3 %v1537_v13  ;;  %v1551_v19 = vld [vmem:[#allocation7 + $0x30] sm:$0xff]  ;;  %v1553_v21 = vld [vmem:[#allocation7 + $0x38] sm:$0xff]  ;;  %v116_v23 = vld [vmem:[#allocation6 + $0x18] sm:$0xff]  ;;  %vm110_vm3 = vcmp.eq.s32.totalorder %v1585_v32, 1  ;;  %vm288_vm15 = vcmp.lt.s32.totalorder %v1585_v32, 32 }
  0x18   :  { %145 = vmatpush.msra.mxu0 %v117_v18  ;;  %168 = vmatpush.msra.mxu1 %v118_v20  ;;  %v1557_v24 = vld [vmem:[#allocation7 + $0x20] sm:$0xff]  ;;  %v1559_v25 = vld [vmem:[#allocation7 + $0x28] sm:$0xff]  ;;  %v1563_v26 = vld [vmem:[#allocation7 + $0x10] sm:$0xff] }
  0x19   :  { %v82_v3 = vstv %s1513_s3  ;;  %208 = vmatpush.msra.mxu2 %v1539_v14  ;;  %228 = vmatpush.msra.mxu3 %v1541_v15  ;;  %v1565_v27 = vld [vmem:[#allocation7 + $0x18] sm:$0xff]  ;;  %v1569_v28 = vld [vmem:[#allocation7] sm:$0xff]  ;;  %v1571_v29 = vld [vmem:[#allocation7 + $0x8] sm:$0xff] }
  0x1a   :  { %v79_v2 = vstv %s1515_s20  ;;  %146 = vmatpush.msra.mxu0 %v115_v22  ;;  %169 = vmatpush.msra.mxu1 %v116_v23  ;;  %v1592_v33 = vld [vmem:[%s1862_s2] ss:$0 sm:$0xff]  ;;  %v114_v38 = vld [vmem:[#allocation6 + $0x8] sm:$0xff] }
  0x1b   :  { %v80_v4 = vmul.f32 %v79_v2, %v1520_v1  ;;  %209 = vmatpush.msra.mxu2 %v1545_v16  ;;  %229 = vmatpush.msra.mxu3 %v1547_v17  ;;  %v113_v37 = vld [vmem:[#allocation6] sm:$0xff]  ;;  %v1660_v41 = vld [vmem:[%s1861_s1 + $0x8] sm:$0xff]  ;;  %s1456_s1 = smov 64  }
  0x1c   :  { %147 = vmatpush.msra.mxu0 %v113_v37  ;;  %170 = vmatpush.msra.mxu1 %v114_v38  ;;  %v81_v42 = vmul.f32 %v79_v2, %v1660_v41  ;;  %v1670_v48 = vld [vmem:[%s1864_s4] sm:$0x3] }
  0x1d   :  { %v83_v5 = vadd.f32 %v82_v3, %v80_v4  ;;  %210 = vmatpush.msra.mxu2 %v1551_v19  ;;  %230 = vmatpush.msra.mxu3 %v1553_v21  ;;  %v121_v49 = vperm.slane %v1670_v48, 0  ;;  %v122_v56 = vperm.slane %v1670_v48, 1 }
  0x1e   :  { %310 = vmatpush.msrb.mxu0 %v1529_v10  ;;  %330 = vmatpush.msrb.mxu1 %v1531_v11  ;;  %v84_v43 = vadd.f32 %v82_v3, %v81_v42 }
  0x1f   :  { %vm1225_vm0 = vcmp.lt.s32.totalorder %v83_v5, 0  ;;  %v1226_v6 = vceil.f32 %v83_v5  ;;  %v1227_v7 = vfloor.f32 %v83_v5  ;;  %211 = vmatpush.msra.mxu2 %v1557_v24  ;;  %231 = vmatpush.msra.mxu3 %v1559_v25 }
  0x20   :  { %311 = vmatpush.msrb.mxu0 %v1533_v12  ;;  %331 = vmatpush.msrb.mxu1 %v1537_v13  ;;  %v1231_v44 = vceil.f32 %v84_v43  ;;  %v1232_v45 = vfloor.f32 %v84_v43  ;;  %vm1230_vm5 = vcmp.lt.s32.totalorder %v84_v43, 0 }
  0x21   :  { %v1228_v8 = vsel %vm1225_vm0, %v1226_v6, %v1227_v7  ;;  %212 = vmatpush.msra.mxu2 %v1563_v26  ;;  %232 = vmatpush.msra.mxu3 %v1565_v27  ;;  %vm194_vm0 = vcmask 523264  }
  0x22   :  { %v1229_v9 = vcvt.f32.s32 %v1228_v8  ;;  %312 = vmatpush.msrb.mxu0 %v1539_v14  ;;  %332 = vmatpush.msrb.mxu1 %v1541_v15  ;;  %v1233_v46 = vsel %vm1230_vm5, %v1231_v44, %v1232_v45 }
  0x23   :  { %213 = vmatpush.msra.mxu2 %v1569_v28  ;;  %233 = vmatpush.msra.mxu3 %v1571_v29  ;;  %v1234_v47 = vcvt.f32.s32 %v1233_v46 }
  0x24   :  { %90 = vperm.xlu0 %1245, %v1229_v9   ;;  %214 = vmatmul.f32.vlgmr.msra.gmra.mxu2 %v1455_v30 }
  0x25   :  { %234 = vmatmul.f32.vlgmr.msra.gmra.mxu3 %v1455_v30  ;;  %417 = vmatpush.msrb.mxu2 %v1529_v10 }
  0x26   :  { %437 = vmatpush.msrb.mxu3 %v1531_v11  ;;  %313 = vmatpush.msrb.mxu0 %v1545_v16 }
  0x27   :  { %418 = vmatpush.msrb.mxu2 %v1533_v12  ;;  %333 = vmatpush.msrb.mxu1 %v1547_v17 }
  0x28   :  { %438 = vmatpush.msrb.mxu3 %v1537_v13  ;;  %314 = vmatpush.msrb.mxu0 %v1551_v19 }
  0x29   :  { %419 = vmatpush.msrb.mxu2 %v1539_v14  ;;  %334 = vmatpush.msrb.mxu1 %v1553_v21 }
  0x2a   :  { %439 = vmatpush.msrb.mxu3 %v1541_v15  ;;  %315 = vmatpush.msrb.mxu0 %v1557_v24 }
  0x2b   :  { %420 = vmatpush.msrb.mxu2 %v1545_v16  ;;  %335 = vmatpush.msrb.mxu1 %v1559_v25 }
  0x2c   :  { %440 = vmatpush.msrb.mxu3 %v1547_v17  ;;  %316 = vmatpush.msrb.mxu0 %v1563_v26 }
  0x2d   :  { %421 = vmatpush.msrb.mxu2 %v1551_v19  ;;  %336 = vmatpush.msrb.mxu1 %v1565_v27 }
  0x2e   :  { %441 = vmatpush.msrb.mxu3 %v1553_v21  ;;  %317 = vmatpush.msrb.mxu0 %v1569_v28 }
  0x2f   :  { %422 = vmatpush.msrb.mxu2 %v1557_v24  ;;  %337 = vmatpush.msrb.mxu1 %v1571_v29 }
  0x30   :  { %442 = vmatpush.msrb.mxu3 %v1559_v25  ;;  %93 = vperm.xlu1 %1246, %v1234_v47  }
  0x31   :  { %423 = vmatpush.msrb.mxu2 %v1563_v26 }
  0x32   :  { %443 = vmatpush.msrb.mxu3 %v1565_v27 }
  0x33   :  { %424 = vmatpush.msrb.mxu2 %v1569_v28 }
  0x34   :  { %444 = vmatpush.msrb.mxu3 %v1571_v29 }
  0x35   :  { %627 = vmatpush.msra.mxu2 %v1529_v10 }
  0x36   :  { %647 = vmatpush.msra.mxu3 %v1531_v11 }
  0x37   :  { %628 = vmatpush.msra.mxu2 %v1533_v12 }
  0x38   :  { %648 = vmatpush.msra.mxu3 %v1537_v13 }
  0x39   :  { %629 = vmatpush.msra.mxu2 %v1539_v14 }
  0x3a   :  { %649 = vmatpush.msra.mxu3 %v1541_v15 }
  0x3b   :  { %630 = vmatpush.msra.mxu2 %v1545_v16 }
  0x3c   :  { %650 = vmatpush.msra.mxu3 %v1547_v17 }
  0x3d   :  { %631 = vmatpush.msra.mxu2 %v1551_v19 }
  0x3e   :  { %651 = vmatpush.msra.mxu3 %v1553_v21 }
  0x3f   :  { %632 = vmatpush.msra.mxu2 %v1557_v24 }
  0x40   :  { %652 = vmatpush.msra.mxu3 %v1559_v25 }
  0x41   :  { %633 = vmatpush.msra.mxu2 %v1563_v26 }
  0x42   :  { %653 = vmatpush.msra.mxu3 %v1565_v27 }
  0x43   :  { %634 = vmatpush.msra.mxu2 %v1569_v28 }
  0x44   :  { %654 = vmatpush.msra.mxu3 %v1571_v29 }
  0x96   :  { %v91_v34 = vpop.permute.xlu0 %90 }
  0x97   :  { %vm95_vm2 = vcmp.eq.s32.totalorder %v1585_v32, %v91_v34 }
  0x98   :  { %v101_v35 = vsel %vm95_vm2, %v1592_v33, 0.0 }
  0x99   :  { %v104_v36 = vsel %vm103_vm1, %v101_v35, 0.0 }
  0x9a   :  { %105 = vadd.xlane.f32.xlu0 %v104_v36 }
  0xa2   :  { %v94_v18 = vpop.permute.xlu1 %93 }
  0xa3   :  { %vm96_vm10 = vcmp.eq.s32.totalorder %v1585_v32, %v94_v18 }
  0xa4   :  { %v102_v20 = vsel %vm96_vm10, %v1592_v33, 0.0 }
  0xa5   :  { %v107_v22 = vsel %vm103_vm1, %v102_v20, 0.0 }
  0xa6   :  { %108 = vadd.xlane.f32.xlu2 %v107_v22 }
  0xa7   :  { %v215_v51 = vpop.f32.mrf.mxu2 }
  0xa8   :  { %v235_v60 = vpop.f32.mrf.mxu3 }
 0x10d   :  { %v106_v39 = vpop.xlane.xlu0 %105 }
 0x10e   :  { %v111_v40 = vsel %vm110_vm3, %v106_v39, %v1520_v1 }
 0x10f   :  { %1186 = vmatmul.msk.f32.vlgmr.msra.gmra.mxu0 %vm125_vm4, %v111_v40  ;;  %1188 = vmatmul.msk.f32.vlgmr.msra.gmra.mxu1 %vm125_vm4, %v111_v40 }
 0x110   :  { %522 = vmatpush.msra.mxu0 %v1529_v10  ;;  %542 = vmatpush.msra.mxu1 %v1531_v11 }
 0x112   :  { %523 = vmatpush.msra.mxu0 %v1533_v12  ;;  %543 = vmatpush.msra.mxu1 %v1537_v13 }
 0x114   :  { %524 = vmatpush.msra.mxu0 %v1539_v14  ;;  %544 = vmatpush.msra.mxu1 %v1541_v15 }
 0x116   :  { %525 = vmatpush.msra.mxu0 %v1545_v16  ;;  %545 = vmatpush.msra.mxu1 %v1547_v17 }
 0x118   :  { %526 = vmatpush.msra.mxu0 %v1551_v19  ;;  %546 = vmatpush.msra.mxu1 %v1553_v21 }
 0x11a   :  { %527 = vmatpush.msra.mxu0 %v1557_v24  ;;  %547 = vmatpush.msra.mxu1 %v1559_v25 }
 0x11c   :  { %528 = vmatpush.msra.mxu0 %v1563_v26  ;;  %548 = vmatpush.msra.mxu1 %v1565_v27 }
 0x11e   :  { %529 = vmatpush.msra.mxu0 %v1569_v28  ;;  %549 = vmatpush.msra.mxu1 %v1571_v29 }
 0x18c   :  { %v149_v50 = vpop.f32.mrf.mxu0  ;;  %v172_v58 = vpop.f32.mrf.mxu1 }
 0x18d   :  { %v1675_v52 = vadd.f32 %v149_v50, %v121_v49  ;;  %v1681_v59 = vadd.f32 %v172_v58, %v122_v56 }
 0x18f   :  { %v238_v53 = vadd.f32 %v215_v51, %v1675_v52  ;;  %v239_v62 = vadd.f32 %v235_v60, %v1681_v59  ;;  %v109_v51 = vpop.xlane.xlu2 %108 }
 0x191   :  { %v1190_v54 = vmul.f32 -1.442695, %v238_v53  ;;  %v1191_v23 = vmul.f32 -1.442695, %v239_v62  ;;  %v112_v53 = vsel %vm110_vm3, %v109_v51, %v1660_v41 }
 0x192   :  { %1187 = vmatmul.msk.f32.gmra.mxu0 %vm125_vm4, %v112_v53  ;;  %1189 = vmatmul.msk.f32.gmra.mxu1 %vm125_vm4, %v112_v53 }
 0x193   :  { %1249 = vpow2.f32 %v1190_v54 }
 0x199   :  { %v1250_v55 = vpop.eup %1249 }
 0x19a   :  { %v246_v57 = vadd.f32 1.0, %v1250_v55 }
 0x19c   :  { %1251 = vrcp.f32 %v246_v57  ;;  %v259_v1 = vand.u32 2147483648, %v246_v57  ;;  %v257_v3 = vand.u32 2147483647, %v246_v57  ;;  %vm253_vm7 = vweird.f32 %v246_v57 }
 0x19d   :  { %1253 = vtanh.f32 %v239_v62 }
 0x19e   :  { %v260_v5 = vor.u32 1.1754944e-38, %v259_v1  ;;  %vm258_vm9 = vcmp.eq.f32.partialorder %v257_v3, 8.507059e+37  ;;  %1255 = vpow2.f32 %v1191_v23 }
 0x1a2   :  { %v1252_v61 = vpop.eup %1251 }
 0x1a3   :  { %v249_v63 = vmul.f32 %v1252_v61, %v246_v57  ;;  %vm254_vm6 = vweird.f32 %v1252_v61  ;;  %v1254_v7 = vpop.eup %1253 }
 0x1a4   :  { %vm255_vm8 = vmor %vm253_vm7, %vm254_vm6  ;;  %v1256_v30 = vpop.eup %1255 }
 0x1a5   :  { %v250_v0 = vsub.f32 1.0, %v249_v63  ;;  %v247_v31 = vadd.f32 1.0, %v1256_v30 }
 0x1a7   :  { %v251_v2 = vmul.f32 %v1252_v61, %v250_v0  ;;  %1257 = vrcp.f32 %v247_v31  ;;  %v274_v33 = vand.u32 2147483648, %v247_v31  ;;  %vm268_vm12 = vweird.f32 %v247_v31 }
 0x1a8   :  { %v272_v43 = vand.u32 2147483647, %v247_v31 }
 0x1a9   :  { %v252_v4 = vadd.f32 %v1252_v61, %v251_v2  ;;  %v275_v45 = vor.u32 1.1754944e-38, %v274_v33 }
 0x1aa   :  { %vm273_vm14 = vcmp.eq.f32.partialorder %v272_v43, 8.507059e+37 }
 0x1ab   :  { %v256_v6 = vsel %vm255_vm8, %v1252_v61, %v252_v4 }
 0x1ac   :  { %v261_v8 = vsel %vm258_vm9, %v260_v5, %v256_v6 }
 0x1ad   :  { %v280_v9 = vmul.f32 %v1254_v7, %v261_v8  ;;  %v1258_v34 = vpop.eup %1257  ;;  %v279_v38 = vmul.f32 0.0, %v261_v8 }
 0x1ae   :  { %v264_v35 = vmul.f32 %v1258_v34, %v247_v31  ;;  %vm269_vm11 = vweird.f32 %v1258_v34 }
 0x1af   :  { %282 = vrot.lane.b32.xlu1 %v280_v9, %s1456_s1  ;;  %vm270_vm13 = vmor %vm268_vm12, %vm269_vm11 }
 0x1b0   :  { %v265_v36 = vsub.f32 1.0, %v264_v35 }
 0x1b2   :  { %v266_v37 = vmul.f32 %v1258_v34, %v265_v36 }
 0x1b4   :  { %v267_v42 = vadd.f32 %v1258_v34, %v266_v37 }
 0x1b6   :  { %v271_v44 = vsel %vm270_vm13, %v1258_v34, %v267_v42 }
 0x1b7   :  { %v276_v47 = vsel %vm273_vm14, %v275_v45, %v271_v44 }
 0x20f   :  { %v1719_v60 = vpop.f32.mrf.mxu0  ;;  %v1722_v0 = vpop.f32.mrf.mxu1 }
 0x221   :  { %v283_v39 = vpop.permute.xlu1 %282 }
 0x222   :  { %v285_v40 = vadd.f32 %v283_v39, %v279_v38 }
 0x224   :  { %1259 = vtanh.f32 %v285_v40  ;;  %295 = vrot.lane.b32.xlu1 %v285_v40, %s1456_s1 }
 0x22a   :  { %v1260_v46 = vpop.eup %1259 }
 0x22b   :  { %v287_v50 = vmul.f32 %v1260_v46, %v276_v47 }
 0x22d   :  { %290 = vrot.lane.b32.xlu2 %v287_v50, %s1456_s1 }
 0x287   :  { %v291_v54 = vpop.permute.xlu2 %290 }
 0x288   :  { %v293_v55 = vsel %vm288_vm15, %v291_v54, 0.0 }
 0x289   :  { %1192 = vmatmul.msk.f32.vlgmr.msrb.gmra.mxu0 %vm194_vm0, %v293_v55  ;;  %1193 = vmatmul.msk.f32.vlgmr.msrb.gmra.mxu1 %vm194_vm0, %v293_v55 }
 0x28a   :  { %725 = vmatpush.msrb.mxu0 %v1529_v10  ;;  %745 = vmatpush.msrb.mxu1 %v1531_v11 }
 0x28c   :  { %726 = vmatpush.msrb.mxu0 %v1533_v12  ;;  %746 = vmatpush.msrb.mxu1 %v1537_v13 }
 0x28e   :  { %727 = vmatpush.msrb.mxu0 %v1539_v14  ;;  %747 = vmatpush.msrb.mxu1 %v1541_v15 }
 0x290   :  { %728 = vmatpush.msrb.mxu0 %v1545_v16  ;;  %748 = vmatpush.msrb.mxu1 %v1547_v17 }
 0x292   :  { %729 = vmatpush.msrb.mxu0 %v1551_v19  ;;  %749 = vmatpush.msrb.mxu1 %v1553_v21 }
 0x294   :  { %730 = vmatpush.msrb.mxu0 %v1557_v24  ;;  %750 = vmatpush.msrb.mxu1 %v1559_v25 }
 0x296   :  { %v296_v41 = vpop.permute.xlu1 %295  ;;  %731 = vmatpush.msrb.mxu0 %v1563_v26  ;;  %751 = vmatpush.msrb.mxu1 %v1565_v27 }
 0x297   :  { %v298_v57 = vsel %vm288_vm15, %v296_v41, 0.0 }
 0x298   :  { %v390_v58 = vrot.slane %v298_v57, 6  ;;  %732 = vmatpush.msrb.mxu0 %v1569_v28  ;;  %752 = vmatpush.msrb.mxu1 %v1571_v29 }
 0x29a   :  { %391 = vrot.lane.b32.xlu1 %v390_v58, %s1456_s1 }
 0x306   :  { %v319_v61 = vpop.f32.mrf.mxu0  ;;  %v339_v3 = vpop.f32.mrf.mxu1 }
 0x307   :  { %v344_v62 = vrot.slane %v319_v61, 6  ;;  %v345_v4 = vrot.slane %v339_v3, 6 }
 0x309   :  { %v348_v63 = vadd.f32 %v344_v62, %v1675_v52  ;;  %v349_v6 = vadd.f32 %v345_v4, %v1681_v59 }
 0x30b   :  { %v1194_v1 = vmul.f32 -1.442695, %v348_v63  ;;  %v1195_v36 = vmul.f32 -1.442695, %v349_v6 }
 0x30c   :  { %v392_v42 = vpop.permute.xlu1 %391 }
 0x30d   :  { %1261 = vpow2.f32 %v1194_v1 }
 0x313   :  { %v1262_v2 = vpop.eup %1261 }
 0x314   :  { %v356_v32 = vadd.f32 1.0, %v1262_v2 }
 0x316   :  { %1263 = vrcp.f32 %v356_v32  ;;  %v369_v9 = vand.u32 2147483648, %v356_v32  ;;  %v367_v20 = vand.u32 2147483647, %v356_v32  ;;  %vm363_vm2 = vweird.f32 %v356_v32 }
 0x317   :  { %1265 = vtanh.f32 %v349_v6 }
 0x318   :  { %v370_v23 = vor.u32 1.1754944e-38, %v369_v9  ;;  %vm368_vm4 = vcmp.eq.f32.partialorder %v367_v20, 8.507059e+37  ;;  %1267 = vpow2.f32 %v1195_v36 }
 0x31c   :  { %v1264_v5 = vpop.eup %1263 }
 0x31d   :  { %v359_v7 = vmul.f32 %v1264_v5, %v356_v32  ;;  %vm364_vm1 = vweird.f32 %v1264_v5  ;;  %v1266_v31 = vpop.eup %1265 }
 0x31e   :  { %vm365_vm3 = vmor %vm363_vm2, %vm364_vm1  ;;  %v1268_v37 = vpop.eup %1267 }
 0x31f   :  { %v360_v8 = vsub.f32 1.0, %v359_v7  ;;  %v357_v38 = vadd.f32 1.0, %v1268_v37 }
 0x321   :  { %v361_v18 = vmul.f32 %v1264_v5, %v360_v8  ;;  %1269 = vrcp.f32 %v357_v38  ;;  %v384_v50 = vand.u32 2147483648, %v357_v38  ;;  %vm378_vm6 = vweird.f32 %v357_v38 }
 0x322   :  { %v382_v51 = vand.u32 2147483647, %v357_v38 }
 0x323   :  { %v362_v22 = vadd.f32 %v1264_v5, %v361_v18  ;;  %v385_v54 = vor.u32 1.1754944e-38, %v384_v50 }
 0x324   :  { %vm383_vm8 = vcmp.eq.f32.partialorder %v382_v51, 8.507059e+37 }
 0x325   :  { %v366_v30 = vsel %vm365_vm3, %v1264_v5, %v362_v22 }
 0x326   :  { %v371_v34 = vsel %vm368_vm4, %v370_v23, %v366_v30 }
 0x327   :  { %v395_v35 = vmul.f32 %v1266_v31, %v371_v34  ;;  %v1270_v39 = vpop.eup %1269  ;;  %v394_v44 = vmul.f32 %v392_v42, %v371_v34 }
 0x328   :  { %v374_v40 = vmul.f32 %v1270_v39, %v357_v38  ;;  %vm379_vm5 = vweird.f32 %v1270_v39 }
 0x329   :  { %397 = vrot.lane.b32.xlu1 %v395_v35, %s1456_s1  ;;  %vm380_vm7 = vmor %vm378_vm6, %vm379_vm5 }
 0x32a   :  { %v375_v33 = vsub.f32 1.0, %v374_v40 }
 0x32c   :  { %v376_v43 = vmul.f32 %v1270_v39, %v375_v33 }
 0x32e   :  { %v377_v47 = vadd.f32 %v1270_v39, %v376_v43 }
 0x330   :  { %v381_v53 = vsel %vm380_vm7, %v1270_v39, %v377_v47 }
 0x331   :  { %v386_v41 = vsel %vm383_vm8, %v385_v54, %v381_v53 }
 0x39b   :  { %v398_v45 = vpop.permute.xlu1 %397 }
 0x39c   :  { %v1726_v46 = vadd.f32 %v398_v45, %v394_v44 }
 0x39e   :  { %1271 = vtanh.f32 %v1726_v46  ;;  %v497_v31 = vrot.slane %v1726_v46, 6 }
 0x3a4   :  { %v1272_v55 = vpop.eup %1271 }
 0x3a5   :  { %v402_v57 = vmul.f32 %v1272_v55, %v386_v41 }
 0x3a7   :  { %v404_v58 = vrot.slane %v402_v57, 2 }
 0x3a9   :  { %405 = vrot.lane.b32.xlu2 %v404_v58, %s1456_s1 }
 0x403   :  { %v406_v61 = vpop.permute.xlu2 %405 }
 0x404   :  { %1196 = vmatmul.msk.f32.vlgmr.msrb.gmra.mxu2 %vm194_vm0, %v406_v61  ;;  %1197 = vmatmul.msk.f32.vlgmr.msrb.gmra.mxu3 %vm194_vm0, %v406_v61 }
 0x405   :  { %830 = vmatpush.msrb.mxu2 %v1529_v10  ;;  %850 = vmatpush.msrb.mxu3 %v1531_v11 }
 0x407   :  { %831 = vmatpush.msrb.mxu2 %v1533_v12  ;;  %851 = vmatpush.msrb.mxu3 %v1537_v13 }
 0x409   :  { %832 = vmatpush.msrb.mxu2 %v1539_v14  ;;  %852 = vmatpush.msrb.mxu3 %v1541_v15 }
 0x40b   :  { %833 = vmatpush.msrb.mxu2 %v1545_v16  ;;  %853 = vmatpush.msrb.mxu3 %v1547_v17 }
 0x40d   :  { %834 = vmatpush.msrb.mxu2 %v1551_v19  ;;  %854 = vmatpush.msrb.mxu3 %v1553_v21 }
 0x40f   :  { %835 = vmatpush.msrb.mxu2 %v1557_v24  ;;  %855 = vmatpush.msrb.mxu3 %v1559_v25 }
 0x411   :  { %836 = vmatpush.msrb.mxu2 %v1563_v26  ;;  %856 = vmatpush.msrb.mxu3 %v1565_v27 }
 0x413   :  { %837 = vmatpush.msrb.mxu2 %v1569_v28  ;;  %857 = vmatpush.msrb.mxu3 %v1571_v29 }
 0x487   :  { %v426_v62 = vpop.f32.mrf.mxu2  ;;  %v446_v4 = vpop.f32.mrf.mxu3 }
 0x488   :  { %v451_v63 = vrot.slane %v426_v62, 4  ;;  %v452_v5 = vrot.slane %v446_v4, 4 }
 0x48a   :  { %v455_v1 = vadd.f32 %v451_v63, %v1675_v52  ;;  %v456_v7 = vadd.f32 %v452_v5, %v1681_v59 }
 0x48c   :  { %v1198_v2 = vmul.f32 -1.442695, %v455_v1  ;;  %v1199_v39 = vmul.f32 -1.442695, %v456_v7 }
 0x48e   :  { %1273 = vpow2.f32 %v1198_v2 }
 0x494   :  { %v1274_v32 = vpop.eup %1273 }
 0x495   :  { %v463_v3 = vadd.f32 1.0, %v1274_v32 }
 0x497   :  { %1275 = vrcp.f32 %v463_v3  ;;  %v476_v18 = vand.u32 2147483648, %v463_v3  ;;  %v474_v22 = vand.u32 2147483647, %v463_v3  ;;  %vm470_vm10 = vweird.f32 %v463_v3 }
 0x498   :  { %1277 = vtanh.f32 %v456_v7 }
 0x499   :  { %v477_v30 = vor.u32 1.1754944e-38, %v476_v18  ;;  %vm475_vm12 = vcmp.eq.f32.partialorder %v474_v22, 8.507059e+37  ;;  %1279 = vpow2.f32 %v1199_v39 }
 0x49d   :  { %v1276_v6 = vpop.eup %1275 }
 0x49e   :  { %v466_v8 = vmul.f32 %v1276_v6, %v463_v3  ;;  %vm471_vm9 = vweird.f32 %v1276_v6  ;;  %v1278_v35 = vpop.eup %1277 }
 0x49f   :  { %vm472_vm11 = vmor %vm470_vm10, %vm471_vm9  ;;  %v1280_v40 = vpop.eup %1279 }
 0x4a0   :  { %v467_v9 = vsub.f32 1.0, %v466_v8  ;;  %v464_v42 = vadd.f32 1.0, %v1280_v40 }
 0x4a2   :  { %v468_v20 = vmul.f32 %v1276_v6, %v467_v9  ;;  %1281 = vrcp.f32 %v464_v42  ;;  %v491_v51 = vand.u32 2147483648, %v464_v42  ;;  %vm485_vm14 = vweird.f32 %v464_v42 }
 0x4a3   :  { %v489_v53 = vand.u32 2147483647, %v464_v42 }
 0x4a4   :  { %v469_v23 = vadd.f32 %v1276_v6, %v468_v20  ;;  %v492_v55 = vor.u32 1.1754944e-38, %v491_v51 }
 0x4a5   :  { %vm490_vm1 = vcmp.eq.f32.partialorder %v489_v53, 8.507059e+37 }
 0x4a6   :  { %v473_v34 = vsel %vm472_vm11, %v1276_v6, %v469_v23 }
 0x4a7   :  { %v478_v36 = vsel %vm475_vm12, %v477_v30, %v473_v34 }
 0x4a8   :  { %v500_v37 = vmul.f32 %v1278_v35, %v478_v36  ;;  %v499_v38 = vmul.f32 %v497_v31, %v478_v36  ;;  %v1282_v33 = vpop.eup %1281 }
 0x4a9   :  { %v481_v43 = vmul.f32 %v1282_v33, %v464_v42  ;;  %vm486_vm13 = vweird.f32 %v1282_v33 }
 0x4aa   :  { %502 = vrot.lane.b32.xlu1 %v500_v37, %s1456_s1  ;;  %vm487_vm15 = vmor %vm485_vm14, %vm486_vm13 }
 0x4ab   :  { %v482_v44 = vsub.f32 1.0, %v481_v43 }
 0x4ad   :  { %v483_v45 = vmul.f32 %v1282_v33, %v482_v44 }
 0x4af   :  { %v484_v46 = vadd.f32 %v1282_v33, %v483_v45 }
 0x4b1   :  { %v488_v54 = vsel %vm487_vm15, %v1282_v33, %v484_v46 }
 0x4b2   :  { %v493_v57 = vsel %vm490_vm1, %v492_v55, %v488_v54 }
 0x51c   :  { %v503_v47 = vpop.permute.xlu1 %502 }
 0x51d   :  { %v1752_v50 = vadd.f32 %v503_v47, %v499_v38 }
 0x51f   :  { %1283 = vtanh.f32 %v1752_v50  ;;  %v602_v31 = vrot.slane %v1752_v50, 6 }
 0x525   :  { %v1284_v41 = vpop.eup %1283 }
 0x526   :  { %v507_v58 = vmul.f32 %v1284_v41, %v493_v57 }
 0x528   :  { %v509_v61 = vrot.slane %v507_v58, 4 }
 0x52a   :  { %510 = vrot.lane.b32.xlu2 %v509_v61, %s1456_s1 }
 0x584   :  { %v511_v62 = vpop.permute.xlu2 %510 }
 0x585   :  { %1200 = vmatmul.msk.f32.vlgmr.msra.gmra.mxu0 %vm194_vm0, %v511_v62  ;;  %1201 = vmatmul.msk.f32.vlgmr.msra.gmra.mxu1 %vm194_vm0, %v511_v62 }
 0x586   :  { %935 = vmatpush.msra.mxu0 %v1529_v10  ;;  %955 = vmatpush.msra.mxu1 %v1531_v11 }
 0x588   :  { %936 = vmatpush.msra.mxu0 %v1533_v12  ;;  %956 = vmatpush.msra.mxu1 %v1537_v13 }
 0x58a   :  { %937 = vmatpush.msra.mxu0 %v1539_v14  ;;  %957 = vmatpush.msra.mxu1 %v1541_v15 }
 0x58c   :  { %938 = vmatpush.msra.mxu0 %v1545_v16  ;;  %958 = vmatpush.msra.mxu1 %v1547_v17 }
 0x58e   :  { %939 = vmatpush.msra.mxu0 %v1551_v19  ;;  %959 = vmatpush.msra.mxu1 %v1553_v21 }
 0x590   :  { %940 = vmatpush.msra.mxu0 %v1557_v24  ;;  %960 = vmatpush.msra.mxu1 %v1559_v25 }
 0x592   :  { %941 = vmatpush.msra.mxu0 %v1563_v26  ;;  %961 = vmatpush.msra.mxu1 %v1565_v27 }
 0x594   :  { %942 = vmatpush.msra.mxu0 %v1569_v28  ;;  %962 = vmatpush.msra.mxu1 %v1571_v29 }
 0x602   :  { %v531_v63 = vpop.f32.mrf.mxu0  ;;  %v551_v5 = vpop.f32.mrf.mxu1 }
 0x603   :  { %v556_v1 = vrot.slane %v531_v63, 2  ;;  %v557_v6 = vrot.slane %v551_v5, 2 }
 0x605   :  { %v560_v2 = vadd.f32 %v556_v1, %v1675_v52  ;;  %v561_v8 = vadd.f32 %v557_v6, %v1681_v59 }
 0x607   :  { %v1202_v32 = vmul.f32 -1.442695, %v560_v2  ;;  %v1203_v59 = vmul.f32 -1.442695, %v561_v8 }
 0x609   :  { %1285 = vpow2.f32 %v1202_v32 }
 0x60f   :  { %v1286_v3 = vpop.eup %1285 }
 0x610   :  { %v568_v4 = vadd.f32 1.0, %v1286_v3 }
 0x612   :  { %1287 = vrcp.f32 %v568_v4  ;;  %v581_v20 = vand.u32 2147483648, %v568_v4  ;;  %v579_v23 = vand.u32 2147483647, %v568_v4  ;;  %vm575_vm3 = vweird.f32 %v568_v4 }
 0x613   :  { %1289 = vtanh.f32 %v561_v8 }
 0x614   :  { %v582_v52 = vor.u32 1.1754944e-38, %v581_v20  ;;  %vm580_vm5 = vcmp.eq.f32.partialorder %v579_v23, 8.507059e+37  ;;  %1291 = vpow2.f32 %v1203_v59 }
 0x618   :  { %v1288_v7 = vpop.eup %1287 }
 0x619   :  { %v571_v9 = vmul.f32 %v1288_v7, %v568_v4  ;;  %vm576_vm2 = vweird.f32 %v1288_v7  ;;  %v1290_v35 = vpop.eup %1289 }
 0x61a   :  { %vm577_vm4 = vmor %vm575_vm3, %vm576_vm2  ;;  %v1292_v39 = vpop.eup %1291 }
 0x61b   :  { %v572_v18 = vsub.f32 1.0, %v571_v9  ;;  %v569_v40 = vadd.f32 1.0, %v1292_v39 }
 0x61d   :  { %v573_v22 = vmul.f32 %v1288_v7, %v572_v18  ;;  %1293 = vrcp.f32 %v569_v40  ;;  %v596_v46 = vand.u32 2147483648, %v569_v40  ;;  %vm590_vm7 = vweird.f32 %v569_v40 }
 0x61e   :  { %v594_v51 = vand.u32 2147483647, %v569_v40 }
 0x61f   :  { %v574_v30 = vadd.f32 %v1288_v7, %v573_v22  ;;  %v597_v54 = vor.u32 1.1754944e-38, %v596_v46 }
 0x620   :  { %vm595_vm9 = vcmp.eq.f32.partialorder %v594_v51, 8.507059e+37 }
 0x621   :  { %v578_v34 = vsel %vm577_vm4, %v1288_v7, %v574_v30 }
 0x622   :  { %v583_v36 = vsel %vm580_vm5, %v582_v52, %v578_v34 }
 0x623   :  { %v605_v37 = vmul.f32 %v1290_v35, %v583_v36  ;;  %v604_v38 = vmul.f32 %v602_v31, %v583_v36  ;;  %v1294_v42 = vpop.eup %1293 }
 0x624   :  { %v586_v33 = vmul.f32 %v1294_v42, %v569_v40  ;;  %vm591_vm6 = vweird.f32 %v1294_v42 }
 0x625   :  { %607 = vrot.lane.b32.xlu1 %v605_v37, %s1456_s1  ;;  %vm592_vm8 = vmor %vm590_vm7, %vm591_vm6 }
 0x626   :  { %v587_v43 = vsub.f32 1.0, %v586_v33 }
 0x628   :  { %v588_v44 = vmul.f32 %v1294_v42, %v587_v43 }
 0x62a   :  { %v589_v50 = vadd.f32 %v1294_v42, %v588_v44 }
 0x62c   :  { %v593_v53 = vsel %vm592_vm8, %v1294_v42, %v589_v50 }
 0x62d   :  { %v598_v41 = vsel %vm595_vm9, %v597_v54, %v593_v53 }
 0x697   :  { %v608_v45 = vpop.permute.xlu1 %607 }
 0x698   :  { %v1778_v47 = vadd.f32 %v608_v45, %v604_v38 }
 0x69a   :  { %1295 = vtanh.f32 %v1778_v47 }
 0x6a0   :  { %v1296_v55 = vpop.eup %1295 }
 0x6a1   :  { %v612_v57 = vmul.f32 %v1296_v55, %v598_v41 }
 0x6a3   :  { %v614_v58 = vrot.slane %v612_v57, 6 }
 0x6a5   :  { %615 = vrot.lane.b32.xlu2 %v614_v58, %s1456_s1 }
 0x6ff   :  { %v616_v61 = vpop.permute.xlu2 %615 }
 0x700   :  { %1204 = vmatmul.msk.f32.vlgmr.msra.gmra.mxu2 %vm194_vm0, %v616_v61  ;;  %1205 = vmatmul.msk.f32.vlgmr.msra.gmra.mxu3 %vm194_vm0, %v616_v61 }
 0x701   :  { %1040 = vmatpush.msra.mxu2 %v1529_v10  ;;  %1060 = vmatpush.msra.mxu3 %v1531_v11  ;;  %v1803_v10 = vadd.f32 %v1719_v60, %v121_v49  ;;  %v701_v60 = vrot.slane %v1778_v47, 6 }
 0x703   :  { %1041 = vmatpush.msra.mxu2 %v1533_v12  ;;  %1061 = vmatpush.msra.mxu3 %v1537_v13 }
 0x705   :  { %1042 = vmatpush.msra.mxu2 %v1539_v14  ;;  %1062 = vmatpush.msra.mxu3 %v1541_v15 }
 0x707   :  { %1043 = vmatpush.msra.mxu2 %v1545_v16  ;;  %1063 = vmatpush.msra.mxu3 %v1547_v17  ;;  %v1809_v17 = vadd.f32 %v1722_v0, %v122_v56 }
 0x709   :  { %1044 = vmatpush.msra.mxu2 %v1551_v19  ;;  %1064 = vmatpush.msra.mxu3 %v1553_v21 }
 0x70b   :  { %1045 = vmatpush.msra.mxu2 %v1557_v24  ;;  %1065 = vmatpush.msra.mxu3 %v1559_v25 }
 0x70d   :  { %1046 = vmatpush.msra.mxu2 %v1563_v26  ;;  %1066 = vmatpush.msra.mxu3 %v1565_v27 }
 0x70f   :  { %1047 = vmatpush.msra.mxu2 %v1569_v28  ;;  %1067 = vmatpush.msra.mxu3 %v1571_v29 }
 0x783   :  { %v636_v11 = vpop.f32.mrf.mxu2  ;;  %v656_v16 = vpop.f32.mrf.mxu3 }
 0x784   :  { %v659_v12 = vadd.f32 %v636_v11, %v1803_v10  ;;  %v660_v21 = vadd.f32 %v656_v16, %v1809_v17 }
 0x786   :  { %v1206_v13 = vmul.f32 -1.442695, %v659_v12  ;;  %v1207_v1 = vmul.f32 -1.442695, %v660_v21 }
 0x788   :  { %1297 = vpow2.f32 %v1206_v13 }
 0x78e   :  { %v1298_v14 = vpop.eup %1297 }
 0x78f   :  { %v667_v15 = vadd.f32 1.0, %v1298_v14 }
 0x791   :  { %1299 = vrcp.f32 %v667_v15  ;;  %v680_v26 = vand.u32 2147483648, %v667_v15  ;;  %v678_v28 = vand.u32 2147483647, %v667_v15  ;;  %vm674_vm11 = vweird.f32 %v667_v15 }
 0x792   :  { %1301 = vtanh.f32 %v660_v21 }
 0x793   :  { %v681_v49 = vor.u32 1.1754944e-38, %v680_v26  ;;  %vm679_vm13 = vcmp.eq.f32.partialorder %v678_v28, 8.507059e+37  ;;  %1303 = vpow2.f32 %v1207_v1 }
 0x797   :  { %v1300_v19 = vpop.eup %1299 }
 0x798   :  { %v670_v24 = vmul.f32 %v1300_v19, %v667_v15  ;;  %vm675_vm10 = vweird.f32 %v1300_v19  ;;  %v1302_v56 = vpop.eup %1301 }
 0x799   :  { %vm676_vm12 = vmor %vm674_vm11, %vm675_vm10  ;;  %v1304_v2 = vpop.eup %1303 }
 0x79a   :  { %v671_v25 = vsub.f32 1.0, %v670_v24  ;;  %v668_v32 = vadd.f32 1.0, %v1304_v2 }
 0x79c   :  { %v672_v27 = vmul.f32 %v1300_v19, %v671_v25  ;;  %1305 = vrcp.f32 %v668_v32  ;;  %v695_v18 = vand.u32 2147483648, %v668_v32  ;;  %vm689_vm15 = vweird.f32 %v668_v32 }
 0x79d   :  { %v693_v20 = vand.u32 2147483647, %v668_v32 }
 0x79e   :  { %v673_v29 = vadd.f32 %v1300_v19, %v672_v27  ;;  %v696_v23 = vor.u32 1.1754944e-38, %v695_v18 }
 0x79f   :  { %vm694_vm2 = vcmp.eq.f32.partialorder %v693_v20, 8.507059e+37 }
 0x7a0   :  { %v677_v48 = vsel %vm676_vm12, %v1300_v19, %v673_v29 }
 0x7a1   :  { %v682_v0 = vsel %vm679_vm13, %v681_v49, %v677_v48 }
 0x7a2   :  { %v704_v62 = vmul.f32 %v1302_v56, %v682_v0  ;;  %v703_v63 = vmul.f32 %v701_v60, %v682_v0  ;;  %v1306_v3 = vpop.eup %1305 }
 0x7a3   :  { %v685_v4 = vmul.f32 %v1306_v3, %v668_v32  ;;  %vm690_vm14 = vweird.f32 %v1306_v3 }
 0x7a4   :  { %706 = vrot.lane.b32.xlu0 %v704_v62, %s1456_s1  ;;  %vm691_vm1 = vmor %vm689_vm15, %vm690_vm14 }
 0x7a5   :  { %v686_v5 = vsub.f32 1.0, %v685_v4 }
 0x7a7   :  { %v687_v6 = vmul.f32 %v1306_v3, %v686_v5 }
 0x7a9   :  { %v688_v9 = vadd.f32 %v1306_v3, %v687_v6 }
 0x7ab   :  { %v692_v22 = vsel %vm691_vm1, %v1306_v3, %v688_v9 }
 0x7ac   :  { %v697_v52 = vsel %vm694_vm2, %v696_v23, %v692_v22 }
 0x816   :  { %v707_v7 = vpop.permute.xlu0 %706 }
 0x817   :  { %v709_v8 = vadd.f32 %v707_v7, %v703_v63 }
 0x819   :  { %1307 = vtanh.f32 %v709_v8  ;;  %v805_v54 = vrot.slane %v709_v8, 6 }
 0x81f   :  { %v1308_v30 = vpop.eup %1307 }
 0x820   :  { %v711_v31 = vmul.f32 %v1308_v30, %v697_v52 }
 0x822   :  { %713 = vrot.lane.b32.xlu1 %v711_v31, %s1456_s1 }
 0x894   :  { %v714_v34 = vpop.permute.xlu1 %713 }
 0x895   :  { %1208 = vmatmul.msk.f32.vlgmr.msrb.gmra.mxu0 %vm194_vm0, %v714_v34  ;;  %1209 = vmatmul.msk.f32.vlgmr.msrb.gmra.mxu1 %vm194_vm0, %v714_v34 }
 0x912   :  { %v734_v35 = vpop.f32.mrf.mxu0  ;;  %v754_v40 = vpop.f32.mrf.mxu1 }
 0x913   :  { %v759_v36 = vrot.slane %v734_v35, 6  ;;  %v760_v42 = vrot.slane %v754_v40, 6 }
 0x915   :  { %v763_v37 = vadd.f32 %v759_v36, %v1803_v10  ;;  %v764_v43 = vadd.f32 %v760_v42, %v1809_v17 }
 0x917   :  { %v1210_v38 = vmul.f32 -1.442695, %v763_v37  ;;  %v1211_v11 = vmul.f32 -1.442695, %v764_v43 }
 0x919   :  { %1309 = vpow2.f32 %v1210_v38 }
 0x91f   :  { %v1310_v59 = vpop.eup %1309 }
 0x920   :  { %v771_v39 = vadd.f32 1.0, %v1310_v59 }
 0x922   :  { %1311 = vrcp.f32 %v771_v39  ;;  %v784_v47 = vand.u32 2147483648, %v771_v39  ;;  %v782_v46 = vand.u32 2147483647, %v771_v39  ;;  %vm778_vm4 = vweird.f32 %v771_v39 }
 0x923   :  { %1313 = vtanh.f32 %v764_v43 }
 0x924   :  { %v785_v53 = vor.u32 1.1754944e-38, %v784_v47  ;;  %vm783_vm6 = vcmp.eq.f32.partialorder %v782_v46, 8.507059e+37  ;;  %1315 = vpow2.f32 %v1211_v11 }
 0x928   :  { %v1312_v33 = vpop.eup %1311 }
 0x929   :  { %v774_v44 = vmul.f32 %v1312_v33, %v771_v39  ;;  %vm779_vm3 = vweird.f32 %v1312_v33  ;;  %v1314_v41 = vpop.eup %1313 }
 0x92a   :  { %vm780_vm5 = vmor %vm778_vm4, %vm779_vm3  ;;  %v1316_v12 = vpop.eup %1315 }
 0x92b   :  { %v775_v45 = vsub.f32 1.0, %v774_v44  ;;  %v772_v13 = vadd.f32 1.0, %v1316_v12 }
 0x92d   :  { %v776_v50 = vmul.f32 %v1312_v33, %v775_v45  ;;  %1317 = vrcp.f32 %v772_v13  ;;  %v799_v26 = vand.u32 2147483648, %v772_v13  ;;  %vm793_vm8 = vweird.f32 %v772_v13 }
 0x92e   :  { %v797_v27 = vand.u32 2147483647, %v772_v13 }
 0x92f   :  { %v777_v51 = vadd.f32 %v1312_v33, %v776_v50  ;;  %v800_v29 = vor.u32 1.1754944e-38, %v799_v26 }
 0x930   :  { %vm798_vm10 = vcmp.eq.f32.partialorder %v797_v27, 8.507059e+37 }
 0x931   :  { %v781_v55 = vsel %vm780_vm5, %v1312_v33, %v777_v51 }
 0x932   :  { %v786_v57 = vsel %vm783_vm6, %v785_v53, %v781_v55 }
 0x933   :  { %v808_v58 = vmul.f32 %v1314_v41, %v786_v57  ;;  %v807_v61 = vmul.f32 %v805_v54, %v786_v57  ;;  %v1318_v14 = vpop.eup %1317 }
 0x934   :  { %v789_v15 = vmul.f32 %v1318_v14, %v772_v13  ;;  %vm794_vm7 = vweird.f32 %v1318_v14 }
 0x935   :  { %810 = vrot.lane.b32.xlu2 %v808_v58, %s1456_s1  ;;  %vm795_vm9 = vmor %vm793_vm8, %vm794_vm7 }
 0x936   :  { %v790_v16 = vsub.f32 1.0, %v789_v15 }
 0x938   :  { %v791_v19 = vmul.f32 %v1318_v14, %v790_v16 }
 0x93a   :  { %v792_v25 = vadd.f32 %v1318_v14, %v791_v19 }
 0x93c   :  { %v796_v28 = vsel %vm795_vm9, %v1318_v14, %v792_v25 }
 0x93d   :  { %v801_v60 = vsel %vm798_vm10, %v800_v29, %v796_v28 }
 0x98f   :  { %v811_v21 = vpop.permute.xlu2 %810 }
 0x990   :  { %v813_v24 = vadd.f32 %v811_v21, %v807_v61 }
 0x992   :  { %1319 = vtanh.f32 %v813_v24  ;;  %v910_v52 = vrot.slane %v813_v24, 6 }
 0x998   :  { %v1320_v49 = vpop.eup %1319 }
 0x999   :  { %v815_v48 = vmul.f32 %v1320_v49, %v801_v60 }
 0x99b   :  { %v817_v56 = vrot.slane %v815_v48, 2 }
 0x99d   :  { %818 = vrot.lane.b32.xlu1 %v817_v56, %s1456_s1 }
 0xa0f   :  { %v819_v0 = vpop.permute.xlu1 %818 }
 0xa10   :  { %1212 = vmatmul.msk.f32.vlgmr.msrb.gmra.mxu2 %vm194_vm0, %v819_v0  ;;  %1213 = vmatmul.msk.f32.vlgmr.msrb.gmra.mxu3 %vm194_vm0, %v819_v0 }
 0xa93   :  { %v839_v62 = vpop.f32.mrf.mxu2  ;;  %v859_v4 = vpop.f32.mrf.mxu3 }
 0xa94   :  { %v864_v63 = vrot.slane %v839_v62, 4  ;;  %v865_v5 = vrot.slane %v859_v4, 4 }
 0xa96   :  { %v868_v1 = vadd.f32 %v864_v63, %v1803_v10  ;;  %v869_v7 = vadd.f32 %v865_v5, %v1809_v17 }
 0xa98   :  { %v1214_v2 = vmul.f32 -1.442695, %v868_v1  ;;  %v1215_v38 = vmul.f32 -1.442695, %v869_v7 }
 0xa9a   :  { %1321 = vpow2.f32 %v1214_v2 }
 0xaa0   :  { %v1322_v32 = vpop.eup %1321 }
 0xaa1   :  { %v876_v3 = vadd.f32 1.0, %v1322_v32 }
 0xaa3   :  { %1323 = vrcp.f32 %v876_v3  ;;  %v889_v18 = vand.u32 2147483648, %v876_v3  ;;  %v887_v22 = vand.u32 2147483647, %v876_v3  ;;  %vm883_vm12 = vweird.f32 %v876_v3 }
 0xaa4   :  { %1325 = vtanh.f32 %v869_v7 }
 0xaa5   :  { %v890_v30 = vor.u32 1.1754944e-38, %v889_v18  ;;  %vm888_vm14 = vcmp.eq.f32.partialorder %v887_v22, 8.507059e+37  ;;  %1327 = vpow2.f32 %v1215_v38 }
 0xaa9   :  { %v1324_v6 = vpop.eup %1323 }
 0xaaa   :  { %v879_v8 = vmul.f32 %v1324_v6, %v876_v3  ;;  %vm884_vm11 = vweird.f32 %v1324_v6  ;;  %v1326_v34 = vpop.eup %1325 }
 0xaab   :  { %vm885_vm13 = vmor %vm883_vm12, %vm884_vm11  ;;  %v1328_v59 = vpop.eup %1327 }
 0xaac   :  { %v880_v9 = vsub.f32 1.0, %v879_v8  ;;  %v877_v39 = vadd.f32 1.0, %v1328_v59 }
 0xaae   :  { %v881_v20 = vmul.f32 %v1324_v6, %v880_v9  ;;  %1329 = vrcp.f32 %v877_v39  ;;  %v904_v50 = vand.u32 2147483648, %v877_v39  ;;  %vm898_vm1 = vweird.f32 %v877_v39 }
 0xaaf   :  { %v902_v46 = vand.u32 2147483647, %v877_v39 }
 0xab0   :  { %v882_v23 = vadd.f32 %v1324_v6, %v881_v20  ;;  %v905_v53 = vor.u32 1.1754944e-38, %v904_v50 }
 0xab1   :  { %vm903_vm3 = vcmp.eq.f32.partialorder %v902_v46, 8.507059e+37 }
 0xab2   :  { %v886_v31 = vsel %vm885_vm13, %v1324_v6, %v882_v23 }
 0xab3   :  { %v891_v35 = vsel %vm888_vm14, %v890_v30, %v886_v31 }
 0xab4   :  { %v913_v36 = vmul.f32 %v1326_v34, %v891_v35  ;;  %v912_v37 = vmul.f32 %v910_v52, %v891_v35  ;;  %v1330_v40 = vpop.eup %1329 }
 0xab5   :  { %v894_v42 = vmul.f32 %v1330_v40, %v877_v39  ;;  %vm899_vm15 = vweird.f32 %v1330_v40 }
 0xab6   :  { %915 = vrot.lane.b32.xlu2 %v913_v36, %s1456_s1  ;;  %vm900_vm2 = vmor %vm898_vm1, %vm899_vm15 }
 0xab7   :  { %v895_v33 = vsub.f32 1.0, %v894_v42 }
 0xab9   :  { %v896_v43 = vmul.f32 %v1330_v40, %v895_v33 }
 0xabb   :  { %v897_v47 = vadd.f32 %v1330_v40, %v896_v43 }
 0xabd   :  { %v901_v51 = vsel %vm900_vm2, %v1330_v40, %v897_v47 }
 0xabe   :  { %v906_v55 = vsel %vm903_vm3, %v905_v53, %v901_v51 }
 0xb10   :  { %v916_v44 = vpop.permute.xlu2 %915 }
 0xb11   :  { %v918_v45 = vadd.f32 %v916_v44, %v912_v37 }
 0xb13   :  { %1331 = vtanh.f32 %v918_v45  ;;  %v1015_v48 = vrot.slane %v918_v45, 6 }
 0xb19   :  { %v1332_v54 = vpop.eup %1331 }
 0xb1a   :  { %v920_v41 = vmul.f32 %v1332_v54, %v906_v55 }
 0xb1c   :  { %v922_v57 = vrot.slane %v920_v41, 4 }
 0xb1e   :  { %923 = vrot.lane.b32.xlu0 %v922_v57, %s1456_s1 }
 0xb90   :  { %v924_v58 = vpop.permute.xlu0 %923 }
 0xb91   :  { %1216 = vmatmul.msk.f32.vlgmr.msra.gmra.mxu0 %vm194_vm0, %v924_v58  ;;  %1217 = vmatmul.msk.f32.vlgmr.msra.gmra.mxu1 %vm194_vm0, %v924_v58 }
 0xc0e   :  { %v944_v61 = vpop.f32.mrf.mxu0  ;;  %v964_v16 = vpop.f32.mrf.mxu1 }
 0xc0f   :  { %v969_v11 = vrot.slane %v944_v61, 2  ;;  %v970_v19 = vrot.slane %v964_v16, 2  ;;  %v1129_v16 = vld [vmem:[%s1866_s6] sm:$0xff] }
 0xc11   :  { %v973_v12 = vadd.f32 %v969_v11, %v1803_v10  ;;  %v974_v24 = vadd.f32 %v970_v19, %v1809_v17 }
 0xc13   :  { %v1218_v13 = vmul.f32 -1.442695, %v973_v12  ;;  %v1219_v2 = vmul.f32 -1.442695, %v974_v24  ;;  %v1132_v12 = vld [vmem:[%s1866_s6 + $0x18] sm:$0xff] }
 0xc14   :  { %1156 = vmatpush.msrb.mxu0 %v1132_v12 }
 0xc15   :  { %1333 = vpow2.f32 %v1218_v13  ;;  %v1131_v13 = vld [vmem:[%s1866_s6 + $0x10] sm:$0xff] }
 0xc16   :  { %1157 = vmatpush.msrb.mxu0 %v1131_v13 }
 0xc1b   :  { %v1334_v14 = vpop.eup %1333 }
 0xc1c   :  { %v981_v15 = vadd.f32 1.0, %v1334_v14  ;;  %v1130_v14 = vld [vmem:[%s1866_s6 + $0x8] sm:$0xff]  ;;  %s1457_s6 = smov 32  }
 0xc1d   :  { %1158 = vmatpush.msrb.mxu0 %v1130_v14 }
 0xc1e   :  { %1335 = vrcp.f32 %v981_v15  ;;  %v994_v27 = vand.u32 2147483648, %v981_v15  ;;  %v992_v29 = vand.u32 2147483647, %v981_v15  ;;  %vm988_vm5 = vweird.f32 %v981_v15 }
 0xc1f   :  { %1337 = vtanh.f32 %v974_v24  ;;  %1159 = vmatpush.msrb.mxu0 %v1129_v16 }
 0xc20   :  { %v995_v60 = vor.u32 1.1754944e-38, %v994_v27  ;;  %vm993_vm7 = vcmp.eq.f32.partialorder %v992_v29, 8.507059e+37  ;;  %1339 = vpow2.f32 %v1219_v2 }
 0xc24   :  { %v1336_v21 = vpop.eup %1335 }
 0xc25   :  { %v984_v25 = vmul.f32 %v1336_v21, %v981_v15  ;;  %vm989_vm4 = vweird.f32 %v1336_v21  ;;  %v1338_v0 = vpop.eup %1337 }
 0xc26   :  { %vm990_vm6 = vmor %vm988_vm5, %vm989_vm4  ;;  %v1340_v32 = vpop.eup %1339  ;;  %vm1141_vm4 = vcmask 261120   ;;  %vm1164_vm5 = vcmask 25600  }
 0xc27   :  { %v985_v26 = vsub.f32 1.0, %v984_v25  ;;  %v982_v3 = vadd.f32 1.0, %v1340_v32  ;;  %v1248_v32 = vld [vmem:[%s1867_s7] ss:$0 sm:$0xff] }
 0xc29   :  { %v986_v28 = vmul.f32 %v1336_v21, %v985_v26  ;;  %1341 = vrcp.f32 %v982_v3  ;;  %v1009_v20 = vand.u32 2147483648, %v982_v3  ;;  %vm1003_vm9 = vweird.f32 %v982_v3 }
 0xc2a   :  { %v1007_v22 = vand.u32 2147483647, %v982_v3 }
 0xc2b   :  { %v987_v49 = vadd.f32 %v1336_v21, %v986_v28  ;;  %v1010_v30 = vor.u32 1.1754944e-38, %v1009_v20 }
 0xc2c   :  { %vm1008_vm11 = vcmp.eq.f32.partialorder %v1007_v22, 8.507059e+37 }
 0xc2d   :  { %v991_v56 = vsel %vm990_vm6, %v1336_v21, %v987_v49 }
 0xc2e   :  { %v996_v62 = vsel %vm993_vm7, %v995_v60, %v991_v56 }
 0xc2f   :  { %v1018_v63 = vmul.f32 %v1338_v0, %v996_v62  ;;  %v1017_v1 = vmul.f32 %v1015_v48, %v996_v62  ;;  %v1342_v4 = vpop.eup %1341 }
 0xc30   :  { %v999_v5 = vmul.f32 %v1342_v4, %v982_v3  ;;  %vm1004_vm8 = vweird.f32 %v1342_v4 }
 0xc31   :  { %1020 = vrot.lane.b32.xlu1 %v1018_v63, %s1456_s1  ;;  %vm1005_vm10 = vmor %vm1003_vm9, %vm1004_vm8 }
 0xc32   :  { %v1000_v6 = vsub.f32 1.0, %v999_v5 }
 0xc34   :  { %v1001_v7 = vmul.f32 %v1342_v4, %v1000_v6 }
 0xc36   :  { %v1002_v18 = vadd.f32 %v1342_v4, %v1001_v7 }
 0xc38   :  { %v1006_v23 = vsel %vm1005_vm10, %v1342_v4, %v1002_v18 }
 0xc39   :  { %v1011_v31 = vsel %vm1008_vm11, %v1010_v30, %v1006_v23 }
 0xca3   :  { %v1021_v8 = vpop.permute.xlu1 %1020 }
 0xca4   :  { %v1832_v9 = vadd.f32 %v1021_v8, %v1017_v1 }
 0xca6   :  { %1343 = vtanh.f32 %v1832_v9 }
 0xcac   :  { %v1344_v52 = vpop.eup %1343 }
 0xcad   :  { %v1025_v34 = vmul.f32 %v1344_v52, %v1011_v31 }
 0xcaf   :  { %v1027_v35 = vrot.slane %v1025_v34, 6 }
 0xcb1   :  { %1028 = vrot.lane.b32.xlu2 %v1027_v35, %s1456_s1 }
 0xd0b   :  { %v1029_v36 = vpop.permute.xlu2 %1028 }
 0xd0c   :  { %1220 = vmatmul.msk.f32.vlgmr.msra.gmra.mxu2 %vm194_vm0, %v1029_v36  ;;  %1221 = vmatmul.msk.f32.vlgmr.msra.gmra.mxu3 %vm194_vm0, %v1029_v36 }
 0xd8f   :  { %v1049_v37 = vpop.f32.mrf.mxu2  ;;  %v1069_v33 = vpop.f32.mrf.mxu3 }
 0xd90   :  { %v1074_v38 = vrot.slane %v1049_v37, 2  ;;  %v1075_v43 = vrot.slane %v1069_v33, 2 }
 0xd92   :  { %v1078_v59 = vadd.f32 %v1074_v38, %v1803_v10  ;;  %v1079_v45 = vadd.f32 %v1075_v43, %v1809_v17 }
 0xd94   :  { %v1222_v39 = vmul.f32 -1.442695, %v1078_v59  ;;  %v1223_v61 = vmul.f32 -1.442695, %v1079_v45 }
 0xd96   :  { %1345 = vpow2.f32 %v1222_v39 }
 0xd9c   :  { %v1346_v40 = vpop.eup %1345 }
 0xd9d   :  { %v1086_v42 = vadd.f32 1.0, %v1346_v40 }
 0xd9f   :  { %1347 = vrcp.f32 %v1086_v42  ;;  %v1099_v46 = vand.u32 2147483648, %v1086_v42  ;;  %v1097_v53 = vand.u32 2147483647, %v1086_v42  ;;  %vm1093_vm12 = vweird.f32 %v1086_v42 }
 0xda0   :  { %1349 = vtanh.f32 %v1079_v45 }
 0xda1   :  { %v1100_v10 = vor.u32 1.1754944e-38, %v1099_v46  ;;  %vm1098_vm14 = vcmp.eq.f32.partialorder %v1097_v53, 8.507059e+37  ;;  %1351 = vpow2.f32 %v1223_v61 }
 0xda5   :  { %v1348_v44 = vpop.eup %1347 }
 0xda6   :  { %v1089_v47 = vmul.f32 %v1348_v44, %v1086_v42  ;;  %vm1094_vm0 = vweird.f32 %v1348_v44  ;;  %v1350_v41 = vpop.eup %1349 }
 0xda7   :  { %vm1095_vm13 = vmor %vm1093_vm12, %vm1094_vm0  ;;  %v1352_v17 = vpop.eup %1351 }
 0xda8   :  { %v1090_v50 = vsub.f32 1.0, %v1089_v47  ;;  %v1087_v11 = vadd.f32 1.0, %v1352_v17 }
 0xdaa   :  { %v1091_v51 = vmul.f32 %v1348_v44, %v1090_v50  ;;  %1353 = vrcp.f32 %v1087_v11  ;;  %v1114_v29 = vand.u32 2147483648, %v1087_v11  ;;  %vm1108_vm1 = vweird.f32 %v1087_v11 }
 0xdab   :  { %v1112_v49 = vand.u32 2147483647, %v1087_v11 }
 0xdac   :  { %v1092_v54 = vadd.f32 %v1348_v44, %v1091_v51  ;;  %v1115_v48 = vor.u32 1.1754944e-38, %v1114_v29 }
 0xdad   :  { %vm1113_vm3 = vcmp.eq.f32.partialorder %v1112_v49, 8.507059e+37 }
 0xdae   :  { %v1096_v55 = vsel %vm1095_vm13, %v1348_v44, %v1092_v54 }
 0xdaf   :  { %v1101_v57 = vsel %vm1098_vm14, %v1100_v10, %v1096_v55 }
 0xdb0   :  { %v1120_v58 = vmul.f32 %v1350_v41, %v1101_v57  ;;  %v1354_v15 = vpop.eup %1353  ;;  %v1119_v25 = vmul.f32 %v1101_v57, %v1832_v9 }
 0xdb1   :  { %v1104_v19 = vmul.f32 %v1354_v15, %v1087_v11  ;;  %vm1109_vm15 = vweird.f32 %v1354_v15 }
 0xdb2   :  { %1122 = vrot.lane.b32.xlu0 %v1120_v58, %s1456_s1  ;;  %vm1110_vm2 = vmor %vm1108_vm1, %vm1109_vm15 }
 0xdb3   :  { %v1105_v21 = vsub.f32 1.0, %v1104_v19 }
 0xdb5   :  { %v1106_v24 = vmul.f32 %v1354_v15, %v1105_v21 }
 0xdb7   :  { %v1107_v28 = vadd.f32 %v1354_v15, %v1106_v24 }
 0xdb9   :  { %v1111_v60 = vsel %vm1110_vm2, %v1354_v15, %v1107_v28 }
 0xdba   :  { %v1116_v0 = vsel %vm1113_vm3, %v1115_v48, %v1111_v60 }
 0xe24   :  { %v1123_v26 = vpop.permute.xlu0 %1122 }
 0xe25   :  { %v1125_v27 = vadd.f32 %v1123_v26, %v1119_v25 }
 0xe27   :  { %1355 = vtanh.f32 %v1125_v27 }
 0xe2d   :  { %v1356_v56 = vpop.eup %1355 }
 0xe2e   :  { %v1127_v62 = vmul.f32 %v1356_v56, %v1116_v0 }
 0xe30   :  { %v1128_v63 = vmax.f32 %v1127_v62, 0.0 }
 0xe32   :  { %v1138_v1 = vrot.slane %v1128_v63, 6 }
 0xe34   :  { %1139 = vrot.lane.b32.xlu1 %v1138_v1, %s1457_s6 }
 0xea6   :  { %v1140_v2 = vpop.permute.xlu1 %1139 }
 0xea7   :  { %1224 = vmatmul.msk.f32.vlgmr.msrb.gmra.mxu0 %vm1141_vm4, %v1140_v2 }
 0xf24   :  { %v1161_v3 = vpop.f32.mrf.mxu0 }
 0xf25   :  { %v1162_v4 = vadd.f32 %v1248_v32, %v1161_v3 }
 0xf27   :  { %1165 = vst.msk [vmem:[#allocation9] sm:$0x3] %vm1164_vm5, %v1162_v4 }
 0xf28   :  { %1176 = dma.vmem_to_hbm [thread:$0]  %s1172_s15, 32, %s1174_s18, [#allocation4]  }
 0xf29   :  { %1447 = dma.done.wait [#allocation4], 32  }
 0xf2a   :  { %1448 = vsyncadd [#allocation4], 4294967264 }
 0xf2b   :  { %1181 = vsyncpa [#allocation3], 1 }
 0xf2c   :  { %1182 = vsyncpa [#allocation8], 1 }
 0xf2d   :  { %1183 = vsyncpa [#allocation4], 1 }
 0xf2e   :  { %1184 = vsyncpa [#allocation5], 1 }

</bundles_post_ra>
